<compile_context>
chip_gen: v7x
topology: tpu7x:2x2x1
jax: 0.10.0
libtpu: 0.0.40
codegen_flags: <defaults>
</compile_context>

<pallas_src>
import functools

import jax
import jax.numpy as jnp
from jax import lax
from jax.experimental import pallas as pl
from jax.experimental.pallas import tpu as pltpu

DIM_I, DIM_J, DIM_K = 10, 10, 10  # (dimI, dimJ, dimK) from the module __init__


# ------------------------- in-kernel helpers ------------------------------ #
def _sumsq_11(x):
  """Sum of squares of a 2-D array reduced to a (1, 1) f32 array."""
  s = x * x
  s = jnp.sum(s, axis=1, keepdims=True)        # (m, 1)
  return jnp.sum(s, axis=0, keepdims=True)     # (1, 1)


def _norm_11(x):
  """Frobenius norm (torch.norm / torch.norm(..., p=2)) as a (1, 1) array."""
  return jnp.sqrt(_sumsq_11(x))


def _sel_div(rows, cols, *, long_axis, block):
  """S[r,c] = 1 where short_idx == long_idx // block.  Exact integer arithmetic
  (long_idx - short_idx*block in [0, block)); no division, no float rounding."""
  li = lax.broadcasted_iota(jnp.int32, (rows, cols), long_axis)
  si = lax.broadcasted_iota(jnp.int32, (rows, cols), 1 - long_axis)
  diff = li - si * block
  return jnp.where((diff >= 0) & (diff < block), 1.0, 0.0).astype(jnp.float32)


def _sel_mod(rows, cols, *, long_axis, block):
  """S[r,c] = 1 where short_idx == long_idx % block.  Uses the float floor-div
  trick (exact while long index < 2^21; guarded by an assertion)."""
  long_size = rows if long_axis == 0 else cols
  assert long_size < (1 << 21), "float floor-div trick not exact at this size"
  li = lax.broadcasted_iota(jnp.int32, (rows, cols), long_axis)
  si = lax.broadcasted_iota(jnp.int32, (rows, cols), 1 - long_axis)
  q = ((li.astype(jnp.float32) + 0.5) * (1.0 / block)).astype(jnp.int32)
  return jnp.where(li - q * block == si, 1.0, 0.0).astype(jnp.float32)


# ------------------------------- kernel ------------------------------------ #
def _td_kernel(params_ref, data_ref, out_ref, *, d1, d2, d3,
               lambda2, lambda3, lambda4, self_supervised):
  f32 = jnp.float32
  jk = DIM_J * DIM_K
  dt = d2 * d3

  # ---- unpack packed inputs (static ref slices; no extra DMAs) ----
  N = params_ref[0:d1, :]                              # (d1, I)
  D = params_ref[d1:d1 + d2, :]                        # (d2, J)
  T = params_ref[d1 + d2:d1 + d2 + d3, :]              # (d3, K)

  flow = data_ref[0:d1, 0:dt]                          # (d1, d2*d3)
  c2_row = 3 * d1 if self_supervised else d1
  C2 = data_ref[c2_row:c2_row + DIM_I, 0:jk]           # (I, J*K) mode-1 unfolding

  # ---- pred = einsum('ni,dj,tk,ijk->ndt')  ==  N @ (C_(1) @ kron(D, T)^T) ----
  # kronT[(j*K+k), (d*d3+t)] = D[d, j] * T[t, k]  -- built directly transposed so
  # both big contractions below are plain (lhs-last x rhs-first) MXU matmuls.
  sel_jk_j = _sel_div(jk, DIM_J, long_axis=0, block=DIM_K)    # [c == r // K]
  sel_jk_k = _sel_mod(jk, DIM_K, long_axis=0, block=DIM_K)    # [c == r %  K]
  sel_d2_dt = _sel_div(d2, dt, long_axis=1, block=d3)         # [r == c // d3]
  sel_d3_dt = _sel_mod(d3, dt, long_axis=1, block=d3)         # [r == c %  d3]

  d_rows = lax.dot_general(sel_jk_j, D, (((1,), (1,)), ((), ())),
                           preferred_element_type=f32)              # (jk, d2)
  d_expT = jnp.dot(d_rows, sel_d2_dt, preferred_element_type=f32)   # (jk, dt)
  t_rows = lax.dot_general(sel_jk_k, T, (((1,), (1,)), ((), ())),
                           preferred_element_type=f32)              # (jk, d3)
  t_expT = jnp.dot(t_rows, sel_d3_dt, preferred_element_type=f32)   # (jk, dt)
  kronT = d_expT * t_expT                                           # (jk, dt)

  G = jnp.dot(C2, kronT, preferred_element_type=f32)                # (I, dt)
  pred = jnp.dot(N, G, preferred_element_type=f32)                  # (d1, dt)
  out_ref[:, 0:dt] = pred                                           # lane-dense 2-D store

  # ---- loss1: || pred[Flow!=0] - Flow[Flow!=0] ||_2 ----
  diff = jnp.where(flow != 0.0, pred - flow, 0.0)
  loss = _norm_11(diff)

  # ---- loss2: lambda2 * (||N|| + ||D|| + ||T|| + ||C||) ----
  loss = loss + lambda2 * (_norm_11(N) + _norm_11(D) + _norm_11(T) + _norm_11(C2))

  if self_supervised:
    hs = data_ref[d1:2 * d1, 0:d1]                     # (d1, d1)
    ht = data_ref[2 * d1:3 * d1, 0:d1 * d2]            # (d1, d1*d2)  flat [n, m*d2 + d]

    # loss3: lambda3 * || heter_spatial_unmasked - N @ N.T ||_F
    nnt = lax.dot_general(N, N, (((1,), (1,)), ((), ())),
                          preferred_element_type=f32)               # (d1, d1)
    loss = loss + lambda3 * _norm_11(hs - nnt)

    # loss4: einsum('ni,mi,dj->nmd')[n,m,d] == nnt[n,m] * sum_j D[d,j],
    # evaluated on flat (d1, d1*d2) tiles.
    ones_1j = jnp.ones((1, DIM_J), f32)
    dsum_row = lax.dot_general(ones_1j, D, (((1,), (1,)), ((), ())),
                               preferred_element_type=f32)          # (1, d2)
    dsum_tiled = jnp.dot(dsum_row,
                         _sel_mod(d2, d1 * d2, long_axis=1, block=d2),
                         preferred_element_type=f32)                # (1, d1*d2)
    m_sel = _sel_div(d1, d1 * d2, long_axis=1, block=d2)            # (d1, d1*d2)
    result_flat = jnp.dot(nnt, m_sel * dsum_tiled,
                          preferred_element_type=f32)               # (d1, d1*d2)
    loss = loss + lambda4 * _norm_11(ht - result_flat)

  # Scalar loss packed into the lane padding of the pred output tile.
  out_ref[0:1, dt:dt + 1] = loss


# ------------------------------ wrapper ------------------------------------ #
def _pad_cols(x, width):
  pad = width - x.shape[1]
  return x if pad == 0 else jnp.pad(x, ((0, 0), (0, pad)))


def tensor_decomposition_forward(N, D, T, C, source,
                                 heter_spatial_unmasked, heter_spatial_origin,
                                 heter_time_unmasked, heter_time_origin,
                                 modeltype,
                                 lambda1=0.0, lambda2=0.01,
                                 lambda3=0.01, lambda4=0.01):
  del heter_spatial_origin, heter_time_origin, lambda1  # unused in forward (as in PyTorch)
  f32 = jnp.float32
  d1, d2, d3 = N.shape[0], D.shape[0], T.shape[0]
  dt = d2 * d3
  jk = DIM_J * DIM_K
  self_sup = (modeltype == 'self-supervised')

  # ---- pack everything into two input arrays (two DMA descriptors) ----
  params = jnp.concatenate([N.astype(f32), D.astype(f32), T.astype(f32)], axis=0)

  flow = jnp.reshape(source, (d1, dt)).astype(f32)
  c2 = jnp.reshape(C, (DIM_I, jk)).astype(f32)
  width = max(jk, dt, (d1 * d2) if self_sup else 0, d1 if self_sup else 0)
  pieces = [_pad_cols(flow, width)]
  if self_sup:  # heter_* only shipped when actually used
    pieces.append(_pad_cols(heter_spatial_unmasked.astype(f32), width))
    pieces.append(_pad_cols(jnp.reshape(heter_time_unmasked,
                                        (d1, d1 * d2)).astype(f32), width))
  pieces.append(_pad_cols(c2, width))
  data = jnp.concatenate(pieces, axis=0)

  # Single output tile: pred in [:, :dt], scalar loss at [0, dt].
  out_cols = pl.cdiv(dt + 1, 128) * 128

  flops = 2 * (jk * DIM_J * d2 + jk * d2 * dt + jk * DIM_K * d3 + jk * d3 * dt
               + DIM_I * jk * dt + d1 * DIM_I * dt)
  if self_sup:
    flops += 2 * (d1 * DIM_I * d1 + d2 * DIM_J + d2 * d1 * d2 + d1 * d1 * d1 * d2)
  bytes_accessed = 4 * (params.size + data.size + d1 * out_cols)

  kernel = functools.partial(_td_kernel, d1=d1, d2=d2, d3=d3,
                             lambda2=float(lambda2), lambda3=float(lambda3),
                             lambda4=float(lambda4), self_supervised=self_sup)

  vmem = pltpu.MemorySpace.VMEM
  out = pl.pallas_call(
      kernel,
      in_specs=[pl.BlockSpec(memory_space=vmem),
                pl.BlockSpec(memory_space=vmem)],
      out_specs=pl.BlockSpec(memory_space=vmem),
      out_shape=jax.ShapeDtypeStruct((d1, out_cols), f32),
      cost_estimate=pl.CostEstimate(flops=int(flops), transcendentals=8,
                                    bytes_accessed=int(bytes_accessed)),
  )(params, data)

  loss = out[0, dt]
  pred = jnp.reshape(out[:, :dt], (d1, d2, d3))
  return loss, pred


# --------------------------- pure-JAX reference ----------------------------- #
def reference_forward(N, D, T, C, source, hs, ht, modeltype,
                      lambda2, lambda3, lambda4):
  dim1, dim2, dim3 = N.shape[0], D.shape[0], T.shape[0]
  pred = jnp.einsum('ni,dj,tk,ijk->ndt', N, D, T, C)
  flow = jnp.reshape(source, (dim1, dim2, dim3))
  diff = jnp.where(flow != 0, pred - flow, 0.0)
  loss1 = jnp.linalg.norm(diff.reshape(-1))
  loss2 = lambda2 * (jnp.linalg.norm(N) + jnp.linalg.norm(D)
                     + jnp.linalg.norm(T) + jnp.linalg.norm(C.reshape(-1)))
  if modeltype == 'self-supervised':
    loss3 = lambda3 * jnp.linalg.norm(hs - N @ N.T)
    rt = jnp.einsum('ni,mi,dj->nmd', N, N, D)
    loss4 = lambda4 * jnp.linalg.norm((ht - rt).reshape(-1))
    return loss1 + loss2 + loss3 + loss4, pred
  return loss1 + loss2, pred


# --------------------------------- main ------------------------------------ #
if __name__ == "__main__":
  dim1, dim2, dim3 = 8, 8, 8
  lambda1, lambda2, lambda3, lambda4 = 0.1, 0.01, 0.05, 0.05

  key = jax.random.PRNGKey(0)
  ks = jax.random.split(key, 7)
  # Parameters: deterministic stand-in for torch.rand(...) / 10
  N = jax.random.uniform(ks[0], (dim1, DIM_I), jnp.float32) / 10.0
  D = jax.random.uniform(ks[1], (dim2, DIM_J), jnp.float32) / 10.0
  T = jax.random.uniform(ks[2], (dim3, DIM_K), jnp.float32) / 10.0
  C = jax.random.uniform(ks[3], (DIM_I, DIM_J, DIM_K), jnp.float32) / 10.0

  # Inputs
  source = jax.random.uniform(ks[4], (dim1 * dim2 * dim3,), jnp.float32)
  source = jnp.where(source > 0.3, source, 0.0)   # some zeros exercise the mask
  heter_spatial_unmasked = jax.random.uniform(ks[5], (dim1, dim1), jnp.float32)
  heter_time_unmasked = jax.random.uniform(ks[6], (dim1, dim1, dim2), jnp.float32)
  heter_spatial_origin = jnp.zeros_like(heter_spatial_unmasked)  # unused in forward
  heter_time_origin = jnp.zeros_like(heter_time_unmasked)        # unused in forward

  for modeltype in ('self-supervised', 'no-self-supervised'):
    loss, pred = tensor_decomposition_forward(
        N, D, T, C, source, heter_spatial_unmasked, heter_spatial_origin,
        heter_time_unmasked, heter_time_origin, modeltype,
        lambda1, lambda2, lambda3, lambda4)
    loss, pred = jax.block_until_ready((loss, pred))

    ref_loss, ref_pred = reference_forward(
        N, D, T, C, source, heter_spatial_unmasked, heter_time_unmasked,
        modeltype, lambda2, lambda3, lambda4)
    assert jnp.allclose(pred, ref_pred, rtol=1e-4, atol=1e-5), "pred mismatch"
    assert jnp.allclose(loss, ref_loss, rtol=1e-4, atol=1e-5), "loss mismatch"

  print("KERNEL_OK")
</pallas_src>

<mosaic_0001>
module attributes {stable_mosaic.version = 11 : i64} {
  func.func @_td_kernel(%arg0: memref<24x10xf32, #tpu.memory_space<vmem>>, %arg1: memref<34x100xf32, #tpu.memory_space<vmem>>, %arg2: memref<8x128xf32, #tpu.memory_space<vmem>>) attributes {dimension_semantics = [], scalar_prefetch = 0 : i64, scratch_operands = 0 : i64, tpu.core_type = #tpu.core_type<tc>} {
    %c0 = arith.constant 0 : index
    %c0_0 = arith.constant 0 : index
    %0 = vector.load %arg0[%c0, %c0_0] : memref<24x10xf32, #tpu.memory_space<vmem>>, vector<8x10xf32>
    %c8 = arith.constant 8 : index
    %c0_1 = arith.constant 0 : index
    %1 = vector.load %arg0[%c8, %c0_1] : memref<24x10xf32, #tpu.memory_space<vmem>>, vector<8x10xf32>
    %c16 = arith.constant 16 : index
    %c0_2 = arith.constant 0 : index
    %2 = vector.load %arg0[%c16, %c0_2] : memref<24x10xf32, #tpu.memory_space<vmem>>, vector<8x10xf32>
    %c0_3 = arith.constant 0 : index
    %c0_4 = arith.constant 0 : index
    %3 = vector.load %arg1[%c0_3, %c0_4] : memref<34x100xf32, #tpu.memory_space<vmem>>, vector<8x64xf32>
    %c24 = arith.constant 24 : index
    %c0_5 = arith.constant 0 : index
    %4 = vector.load %arg1[%c24, %c0_5] : memref<34x100xf32, #tpu.memory_space<vmem>>, vector<10x100xf32>
    %5 = tpu.iota {dimensions = array<i32: 0>} : vector<100x10xi32>
    %6 = tpu.iota {dimensions = array<i32: 1>} : vector<100x10xi32>
    %c10_i32 = arith.constant 10 : i32
    %7 = vector.broadcast %c10_i32 : i32 to vector<100x10xi32>
    %8 = arith.muli %6, %7 : vector<100x10xi32>
    %9 = arith.subi %5, %8 : vector<100x10xi32>
    %c0_i32 = arith.constant 0 : i32
    %10 = vector.broadcast %c0_i32 : i32 to vector<100x10xi32>
    %11 = arith.cmpi sge, %9, %10 : vector<100x10xi32>
    %c10_i32_6 = arith.constant 10 : i32
    %12 = vector.broadcast %c10_i32_6 : i32 to vector<100x10xi32>
    %13 = arith.cmpi slt, %9, %12 : vector<100x10xi32>
    %14 = arith.andi %11, %13 : vector<100x10xi1>
    %cst = arith.constant 1.000000e+00 : f32
    %cst_7 = arith.constant 0.000000e+00 : f32
    %15 = vector.broadcast %cst : f32 to vector<100x10xf32>
    %16 = vector.broadcast %cst_7 : f32 to vector<100x10xf32>
    %17 = arith.select %14, %15, %16 : vector<100x10xi1>, vector<100x10xf32>
    %18 = tpu.iota {dimensions = array<i32: 0>} : vector<100x10xi32>
    %19 = tpu.iota {dimensions = array<i32: 1>} : vector<100x10xi32>
    %20 = arith.sitofp %18 : vector<100x10xi32> to vector<100x10xf32>
    %cst_8 = arith.constant 5.000000e-01 : f32
    %21 = vector.broadcast %cst_8 : f32 to vector<100x10xf32>
    %22 = arith.addf %20, %21 : vector<100x10xf32>
    %cst_9 = arith.constant 1.000000e-01 : f32
    %23 = vector.broadcast %cst_9 : f32 to vector<100x10xf32>
    %24 = arith.mulf %22, %23 : vector<100x10xf32>
    %25 = arith.fptosi %24 : vector<100x10xf32> to vector<100x10xi32>
    %c10_i32_10 = arith.constant 10 : i32
    %26 = vector.broadcast %c10_i32_10 : i32 to vector<100x10xi32>
    %27 = arith.muli %25, %26 : vector<100x10xi32>
    %28 = arith.subi %18, %27 : vector<100x10xi32>
    %29 = arith.cmpi eq, %28, %19 : vector<100x10xi32>
    %cst_11 = arith.constant 1.000000e+00 : f32
    %cst_12 = arith.constant 0.000000e+00 : f32
    %30 = vector.broadcast %cst_11 : f32 to vector<100x10xf32>
    %31 = vector.broadcast %cst_12 : f32 to vector<100x10xf32>
    %32 = arith.select %29, %30, %31 : vector<100x10xi1>, vector<100x10xf32>
    %33 = tpu.iota {dimensions = array<i32: 1>} : vector<8x64xi32>
    %34 = tpu.iota {dimensions = array<i32: 0>} : vector<8x64xi32>
    %c8_i32 = arith.constant 8 : i32
    %35 = vector.broadcast %c8_i32 : i32 to vector<8x64xi32>
    %36 = arith.muli %34, %35 : vector<8x64xi32>
    %37 = arith.subi %33, %36 : vector<8x64xi32>
    %c0_i32_13 = arith.constant 0 : i32
    %38 = vector.broadcast %c0_i32_13 : i32 to vector<8x64xi32>
    %39 = arith.cmpi sge, %37, %38 : vector<8x64xi32>
    %c8_i32_14 = arith.constant 8 : i32
    %40 = vector.broadcast %c8_i32_14 : i32 to vector<8x64xi32>
    %41 = arith.cmpi slt, %37, %40 : vector<8x64xi32>
    %42 = arith.andi %39, %41 : vector<8x64xi1>
    %cst_15 = arith.constant 1.000000e+00 : f32
    %cst_16 = arith.constant 0.000000e+00 : f32
    %43 = vector.broadcast %cst_15 : f32 to vector<8x64xf32>
    %44 = vector.broadcast %cst_16 : f32 to vector<8x64xf32>
    %45 = arith.select %42, %43, %44 : vector<8x64xi1>, vector<8x64xf32>
    %46 = tpu.iota {dimensions = array<i32: 1>} : vector<8x64xi32>
    %47 = tpu.iota {dimensions = array<i32: 0>} : vector<8x64xi32>
    %48 = arith.sitofp %46 : vector<8x64xi32> to vector<8x64xf32>
    %cst_17 = arith.constant 5.000000e-01 : f32
    %49 = vector.broadcast %cst_17 : f32 to vector<8x64xf32>
    %50 = arith.addf %48, %49 : vector<8x64xf32>
    %cst_18 = arith.constant 1.250000e-01 : f32
    %51 = vector.broadcast %cst_18 : f32 to vector<8x64xf32>
    %52 = arith.mulf %50, %51 : vector<8x64xf32>
    %53 = arith.fptosi %52 : vector<8x64xf32> to vector<8x64xi32>
    %c8_i32_19 = arith.constant 8 : i32
    %54 = vector.broadcast %c8_i32_19 : i32 to vector<8x64xi32>
    %55 = arith.muli %53, %54 : vector<8x64xi32>
    %56 = arith.subi %46, %55 : vector<8x64xi32>
    %57 = arith.cmpi eq, %56, %47 : vector<8x64xi32>
    %cst_20 = arith.constant 1.000000e+00 : f32
    %cst_21 = arith.constant 0.000000e+00 : f32
    %58 = vector.broadcast %cst_20 : f32 to vector<8x64xf32>
    %59 = vector.broadcast %cst_21 : f32 to vector<8x64xf32>
    %60 = arith.select %57, %58, %59 : vector<8x64xi1>, vector<8x64xf32>
    %cst_22 = arith.constant dense<0.000000e+00> : vector<100x8xf32>
    %61 = tpu.matmul %17, %1, %cst_22 {dimension_numbers = #tpu.dot_dimension_numbers<[1], [1], [0], [0], [0, 0, 1, 0], [], []>} : vector<100x10xf32>, vector<8x10xf32>, vector<100x8xf32> -> vector<100x8xf32>
    %cst_23 = arith.constant dense<0.000000e+00> : vector<100x64xf32>
    %62 = tpu.matmul %61, %45, %cst_23 {dimension_numbers = #tpu.dot_dimension_numbers<[1], [0], [0], [1], [0, 0, 1, 1], [], []>} : vector<100x8xf32>, vector<8x64xf32>, vector<100x64xf32> -> vector<100x64xf32>
    %cst_24 = arith.constant dense<0.000000e+00> : vector<100x8xf32>
    %63 = tpu.matmul %32, %2, %cst_24 {dimension_numbers = #tpu.dot_dimension_numbers<[1], [1], [0], [0], [0, 0, 1, 0], [], []>} : vector<100x10xf32>, vector<8x10xf32>, vector<100x8xf32> -> vector<100x8xf32>
    %cst_25 = arith.constant dense<0.000000e+00> : vector<100x64xf32>
    %64 = tpu.matmul %63, %60, %cst_25 {dimension_numbers = #tpu.dot_dimension_numbers<[1], [0], [0], [1], [0, 0, 1, 1], [], []>} : vector<100x8xf32>, vector<8x64xf32>, vector<100x64xf32> -> vector<100x64xf32>
    %65 = arith.mulf %62, %64 : vector<100x64xf32>
    %cst_26 = arith.constant dense<0.000000e+00> : vector<10x64xf32>
    %66 = tpu.matmul %4, %65, %cst_26 {dimension_numbers = #tpu.dot_dimension_numbers<[1], [0], [0], [1], [0, 0, 1, 1], [], []>} : vector<10x100xf32>, vector<100x64xf32>, vector<10x64xf32> -> vector<10x64xf32>
    %cst_27 = arith.constant dense<0.000000e+00> : vector<8x64xf32>
    %67 = tpu.matmul %0, %66, %cst_27 {dimension_numbers = #tpu.dot_dimension_numbers<[1], [0], [0], [1], [0, 0, 1, 1], [], []>} : vector<8x10xf32>, vector<10x64xf32>, vector<8x64xf32> -> vector<8x64xf32>
    %c0_28 = arith.constant 0 : index
    %c0_29 = arith.constant 0 : index
    %68 = vector.load %arg2[%c0_28, %c0_29] : memref<8x128xf32, #tpu.memory_space<vmem>>, vector<8x64xf32>
    tpu.vector_store %arg2[%c0_28, %c0_29], %67 {strides = array<i32>} : memref<8x128xf32, #tpu.memory_space<vmem>>, vector<8x64xf32>,
    %cst_30 = arith.constant 0.000000e+00 : f32
    %69 = vector.broadcast %cst_30 : f32 to vector<8x64xf32>
    %70 = arith.cmpf one, %3, %69 : vector<8x64xf32>
    %71 = arith.subf %67, %3 : vector<8x64xf32>
    %cst_31 = arith.constant 0.000000e+00 : f32
    %72 = vector.broadcast %cst_31 : f32 to vector<8x64xf32>
    %73 = arith.select %70, %71, %72 : vector<8x64xi1>, vector<8x64xf32>
    %74 = arith.mulf %73, %73 : vector<8x64xf32>
    %cst_32 = arith.constant dense<0.000000e+00> : vector<8xf32>
    %75 = vector.multi_reduction <add>, %74, %cst_32 [1] : vector<8x64xf32> to vector<8xf32>
    %76 = vector.shape_cast %75 : vector<8xf32> to vector<8x1xf32>
    %cst_33 = arith.constant dense<0.000000e+00> : vector<1xf32>
    %77 = vector.multi_reduction <add>, %76, %cst_33 [0] : vector<8x1xf32> to vector<1xf32>
    %78 = vector.shape_cast %77 : vector<1xf32> to vector<1x1xf32>
    %79 = math.sqrt %78 : vector<1x1xf32>
    %80 = arith.mulf %0, %0 : vector<8x10xf32>
    %cst_34 = arith.constant dense<0.000000e+00> : vector<8xf32>
    %81 = vector.multi_reduction <add>, %80, %cst_34 [1] : vector<8x10xf32> to vector<8xf32>
    %82 = vector.shape_cast %81 : vector<8xf32> to vector<8x1xf32>
    %cst_35 = arith.constant dense<0.000000e+00> : vector<1xf32>
    %83 = vector.multi_reduction <add>, %82, %cst_35 [0] : vector<8x1xf32> to vector<1xf32>
    %84 = vector.shape_cast %83 : vector<1xf32> to vector<1x1xf32>
    %85 = math.sqrt %84 : vector<1x1xf32>
    %86 = arith.mulf %1, %1 : vector<8x10xf32>
    %cst_36 = arith.constant dense<0.000000e+00> : vector<8xf32>
    %87 = vector.multi_reduction <add>, %86, %cst_36 [1] : vector<8x10xf32> to vector<8xf32>
    %88 = vector.shape_cast %87 : vector<8xf32> to vector<8x1xf32>
    %cst_37 = arith.constant dense<0.000000e+00> : vector<1xf32>
    %89 = vector.multi_reduction <add>, %88, %cst_37 [0] : vector<8x1xf32> to vector<1xf32>
    %90 = vector.shape_cast %89 : vector<1xf32> to vector<1x1xf32>
    %91 = math.sqrt %90 : vector<1x1xf32>
    %92 = arith.addf %85, %91 : vector<1x1xf32>
    %93 = arith.mulf %2, %2 : vector<8x10xf32>
    %cst_38 = arith.constant dense<0.000000e+00> : vector<8xf32>
    %94 = vector.multi_reduction <add>, %93, %cst_38 [1] : vector<8x10xf32> to vector<8xf32>
    %95 = vector.shape_cast %94 : vector<8xf32> to vector<8x1xf32>
    %cst_39 = arith.constant dense<0.000000e+00> : vector<1xf32>
    %96 = vector.multi_reduction <add>, %95, %cst_39 [0] : vector<8x1xf32> to vector<1xf32>
    %97 = vector.shape_cast %96 : vector<1xf32> to vector<1x1xf32>
    %98 = math.sqrt %97 : vector<1x1xf32>
    %99 = arith.addf %92, %98 : vector<1x1xf32>
    %100 = arith.mulf %4, %4 : vector<10x100xf32>
    %cst_40 = arith.constant dense<0.000000e+00> : vector<10xf32>
    %101 = vector.multi_reduction <add>, %100, %cst_40 [1] : vector<10x100xf32> to vector<10xf32>
    %102 = vector.shape_cast %101 : vector<10xf32> to vector<10x1xf32>
    %cst_41 = arith.constant dense<0.000000e+00> : vector<1xf32>
    %103 = vector.multi_reduction <add>, %102, %cst_41 [0] : vector<10x1xf32> to vector<1xf32>
    %104 = vector.shape_cast %103 : vector<1xf32> to vector<1x1xf32>
    %105 = math.sqrt %104 : vector<1x1xf32>
    %106 = arith.addf %99, %105 : vector<1x1xf32>
    %cst_42 = arith.constant 0.00999999977 : f32
    %107 = vector.broadcast %cst_42 : f32 to vector<1x1xf32>
    %108 = arith.mulf %107, %106 : vector<1x1xf32>
    %109 = arith.addf %79, %108 : vector<1x1xf32>
    %c8_43 = arith.constant 8 : index
    %c0_44 = arith.constant 0 : index
    %110 = vector.load %arg1[%c8_43, %c0_44] : memref<34x100xf32, #tpu.memory_space<vmem>>, vector<8x8xf32>
    %c16_45 = arith.constant 16 : index
    %c0_46 = arith.constant 0 : index
    %111 = vector.load %arg1[%c16_45, %c0_46] : memref<34x100xf32, #tpu.memory_space<vmem>>, vector<8x64xf32>
    %cst_47 = arith.constant dense<0.000000e+00> : vector<8x8xf32>
    %112 = tpu.matmul %0, %0, %cst_47 {dimension_numbers = #tpu.dot_dimension_numbers<[1], [1], [0], [0], [0, 0, 1, 0], [], []>} : vector<8x10xf32>, vector<8x10xf32>, vector<8x8xf32> -> vector<8x8xf32>
    %113 = arith.subf %110, %112 : vector<8x8xf32>
    %114 = arith.mulf %113, %113 : vector<8x8xf32>
    %cst_48 = arith.constant dense<0.000000e+00> : vector<8xf32>
    %115 = vector.multi_reduction <add>, %114, %cst_48 [1] : vector<8x8xf32> to vector<8xf32>
    %116 = vector.shape_cast %115 : vector<8xf32> to vector<8x1xf32>
    %cst_49 = arith.constant dense<0.000000e+00> : vector<1xf32>
    %117 = vector.multi_reduction <add>, %116, %cst_49 [0] : vector<8x1xf32> to vector<1xf32>
    %118 = vector.shape_cast %117 : vector<1xf32> to vector<1x1xf32>
    %119 = math.sqrt %118 : vector<1x1xf32>
    %cst_50 = arith.constant 5.000000e-02 : f32
    %120 = vector.broadcast %cst_50 : f32 to vector<1x1xf32>
    %121 = arith.mulf %120, %119 : vector<1x1xf32>
    %122 = arith.addf %109, %121 : vector<1x1xf32>
    %cst_51 = arith.constant 1.000000e+00 : f32
    %123 = vector.broadcast %cst_51 : f32 to vector<1x10xf32>
    %cst_52 = arith.constant dense<0.000000e+00> : vector<1x8xf32>
    %124 = tpu.matmul %123, %1, %cst_52 {dimension_numbers = #tpu.dot_dimension_numbers<[1], [1], [0], [0], [0, 0, 1, 0], [], []>} : vector<1x10xf32>, vector<8x10xf32>, vector<1x8xf32> -> vector<1x8xf32>
    %125 = tpu.iota {dimensions = array<i32: 1>} : vector<8x64xi32>
    %126 = tpu.iota {dimensions = array<i32: 0>} : vector<8x64xi32>
    %127 = arith.sitofp %125 : vector<8x64xi32> to vector<8x64xf32>
    %cst_53 = arith.constant 5.000000e-01 : f32
    %128 = vector.broadcast %cst_53 : f32 to vector<8x64xf32>
    %129 = arith.addf %127, %128 : vector<8x64xf32>
    %cst_54 = arith.constant 1.250000e-01 : f32
    %130 = vector.broadcast %cst_54 : f32 to vector<8x64xf32>
    %131 = arith.mulf %129, %130 : vector<8x64xf32>
    %132 = arith.fptosi %131 : vector<8x64xf32> to vector<8x64xi32>
    %c8_i32_55 = arith.constant 8 : i32
    %133 = vector.broadcast %c8_i32_55 : i32 to vector<8x64xi32>
    %134 = arith.muli %132, %133 : vector<8x64xi32>
    %135 = arith.subi %125, %134 : vector<8x64xi32>
    %136 = arith.cmpi eq, %135, %126 : vector<8x64xi32>
    %cst_56 = arith.constant 1.000000e+00 : f32
    %cst_57 = arith.constant 0.000000e+00 : f32
    %137 = vector.broadcast %cst_56 : f32 to vector<8x64xf32>
    %138 = vector.broadcast %cst_57 : f32 to vector<8x64xf32>
    %139 = arith.select %136, %137, %138 : vector<8x64xi1>, vector<8x64xf32>
    %cst_58 = arith.constant dense<0.000000e+00> : vector<1x64xf32>
    %140 = tpu.matmul %124, %139, %cst_58 {dimension_numbers = #tpu.dot_dimension_numbers<[1], [0], [0], [1], [0, 0, 1, 1], [], []>} : vector<1x8xf32>, vector<8x64xf32>, vector<1x64xf32> -> vector<1x64xf32>
    %141 = tpu.iota {dimensions = array<i32: 1>} : vector<8x64xi32>
    %142 = tpu.iota {dimensions = array<i32: 0>} : vector<8x64xi32>
    %c8_i32_59 = arith.constant 8 : i32
    %143 = vector.broadcast %c8_i32_59 : i32 to vector<8x64xi32>
    %144 = arith.muli %142, %143 : vector<8x64xi32>
    %145 = arith.subi %141, %144 : vector<8x64xi32>
    %c0_i32_60 = arith.constant 0 : i32
    %146 = vector.broadcast %c0_i32_60 : i32 to vector<8x64xi32>
    %147 = arith.cmpi sge, %145, %146 : vector<8x64xi32>
    %c8_i32_61 = arith.constant 8 : i32
    %148 = vector.broadcast %c8_i32_61 : i32 to vector<8x64xi32>
    %149 = arith.cmpi slt, %145, %148 : vector<8x64xi32>
    %150 = arith.andi %147, %149 : vector<8x64xi1>
    %cst_62 = arith.constant 1.000000e+00 : f32
    %cst_63 = arith.constant 0.000000e+00 : f32
    %151 = vector.broadcast %cst_62 : f32 to vector<8x64xf32>
    %152 = vector.broadcast %cst_63 : f32 to vector<8x64xf32>
    %153 = arith.select %150, %151, %152 : vector<8x64xi1>, vector<8x64xf32>
    %154 = vector.broadcast %140 : vector<1x64xf32> to vector<8x64xf32>
    %155 = arith.mulf %153, %154 : vector<8x64xf32>
    %cst_64 = arith.constant dense<0.000000e+00> : vector<8x64xf32>
    %156 = tpu.matmul %112, %155, %cst_64 {dimension_numbers = #tpu.dot_dimension_numbers<[1], [0], [0], [1], [0, 0, 1, 1], [], []>} : vector<8x8xf32>, vector<8x64xf32>, vector<8x64xf32> -> vector<8x64xf32>
    %157 = arith.subf %111, %156 : vector<8x64xf32>
    %158 = arith.mulf %157, %157 : vector<8x64xf32>
    %cst_65 = arith.constant dense<0.000000e+00> : vector<8xf32>
    %159 = vector.multi_reduction <add>, %158, %cst_65 [1] : vector<8x64xf32> to vector<8xf32>
    %160 = vector.shape_cast %159 : vector<8xf32> to vector<8x1xf32>
    %cst_66 = arith.constant dense<0.000000e+00> : vector<1xf32>
    %161 = vector.multi_reduction <add>, %160, %cst_66 [0] : vector<8x1xf32> to vector<1xf32>
    %162 = vector.shape_cast %161 : vector<1xf32> to vector<1x1xf32>
    %163 = math.sqrt %162 : vector<1x1xf32>
    %cst_67 = arith.constant 5.000000e-02 : f32
    %164 = vector.broadcast %cst_67 : f32 to vector<1x1xf32>
    %165 = arith.mulf %164, %163 : vector<1x1xf32>
    %166 = arith.addf %122, %165 : vector<1x1xf32>
    %c0_68 = arith.constant 0 : index
    %c64 = arith.constant 64 : index
    %167 = vector.load %arg2[%c0_68, %c64] : memref<8x128xf32, #tpu.memory_space<vmem>>, vector<1x1xf32>
    tpu.vector_store %arg2[%c0_68, %c64], %166 {strides = array<i32>} : memref<8x128xf32, #tpu.memory_space<vmem>>, vector<1x1xf32>,
    return
  }
}

</mosaic_0001>

<bundles_post_ra>
// kernel: tpu_custom_call.1
= control target key start
LH: loop header
LB: loop body
LE: loop exit
PB: predicated region body
PF: predicated region fallthrough
CT: control target
= control target key end

     0   :  { %vm218_vm0 = vcmask 80896   ;;  %v18_v1 = vlaneseq  ;;  %s2471_s0 = inlined_call_operand.vmem [shape: f32[24,10], index: 0, kind: input, shape index: {}]   ;;  %s2472_s1 = inlined_call_operand.vmem [shape: f32[34,100], index: 1, kind: input, shape index: {}]   ;;  %s2473_s2 = inlined_call_operand.hbm [shape: f32[8,128], index: 2, kind: output, shape index: {}]  }
   0x1   :  { %v2026_v0 = vld [vmem:[%s2471_s0 + $0x8] sm:$0xff] }
   0x2   :  { %7 = vsyncpa [#allocation3], 0  ;;  %v2002_v2 = vmov 0.0   ;;  %vm2003_vm1 = vmmov 0   ;;  %v2033_v3 = vshrl.u32 %v18_v1, 7  ;;  %v2035_v4 = vand.u32 127, %v18_v1 }
   0x3   :  { %1682 = vmatprep.subr.mxu0 %v2002_v2  ;;  %1684 = vmatprep.mubr.msk.f32.mxu0 %vm2003_vm1, %v2002_v2  ;;  %v2004_v47 = vmov 1.0   ;;  %v2171_v48 = vld [vmem:[%s2471_s0 + $0x10] sm:$0xff] }
   0x4   :  { %1683 = vmatpush3.xpose.msk.msra.mxu0 %vm218_vm0, %v2026_v0  ;;  %1723 = vmatprep.subr.mxu1 %v2002_v2  ;;  %v2042_v5 = vmul.u32 10, %v2035_v4  ;;  %v2045_v6 = vadd.s32 8, %v2033_v3  ;;  %v2048_v7 = vadd.s32 16, %v2033_v3  ;;  %v2057_v11 = vadd.s32 24, %v2033_v3 }
   0x5   :  { %1725 = vmatprep.mubr.msk.f32.mxu1 %vm2003_vm1, %v2002_v2  ;;  %1805 = vmatprep.subr.mxu0 %v2002_v2  ;;  %v2060_v12 = vadd.s32 32, %v2033_v3  ;;  %v2072_v17 = vadd.s32 40, %v2033_v3  ;;  %v2081_v20 = vadd.s32 48, %v2033_v3  ;;  %v2090_v23 = vadd.s32 56, %v2033_v3 }
   0x6   :  { %v35_v8 = vsub.s32 %v2033_v3, %v2042_v5  ;;  %v36_v9 = vsub.s32 %v2045_v6, %v2042_v5  ;;  %v37_v10 = vsub.s32 %v2048_v7, %v2042_v5  ;;  %v38_v14 = vsub.s32 %v2057_v11, %v2042_v5 }
   0x7   :  { %v39_v16 = vsub.s32 %v2060_v12, %v2042_v5  ;;  %v40_v19 = vsub.s32 %v2072_v17, %v2042_v5  ;;  %v41_v22 = vsub.s32 %v2081_v20, %v2042_v5  ;;  %v42_v25 = vsub.s32 %v2090_v23, %v2042_v5 }
   0x8   :  { %vm48_vm2 = vcmp.ge.s32.totalorder %v35_v8, 0  ;;  %vm61_vm3 = vcmp.lt.s32.totalorder %v35_v8, 10  ;;  %vm49_vm4 = vcmp.ge.s32.totalorder %v36_v9, 0  ;;  %vm62_vm5 = vcmp.lt.s32.totalorder %v36_v9, 10 }
   0x9   :  { %vm74_vm6 = vmand %vm48_vm2, %vm61_vm3  ;;  %vm50_vm8 = vcmp.ge.s32.totalorder %v37_v10, 0  ;;  %vm63_vm9 = vcmp.lt.s32.totalorder %v37_v10, 10  ;;  %vm51_vm11 = vcmp.ge.s32.totalorder %v38_v14, 0  ;;  %vm64_vm12 = vcmp.lt.s32.totalorder %v38_v14, 10 }
   0xa   :  { %v87_v13 = vsel %vm74_vm6, 1.0, %v2002_v2  ;;  %vm75_vm7 = vmand %vm49_vm4, %vm62_vm5  ;;  %vm52_vm14 = vcmp.ge.s32.totalorder %v39_v16, 0  ;;  %vm65_vm15 = vcmp.lt.s32.totalorder %v39_v16, 10  ;;  %vm53_vm3 = vcmp.ge.s32.totalorder %v40_v19, 0 }
   0xb   :  { %1685 = vmatmul.mubr.msk.f32.vlgmr.msra.gmra.mrb[0].mxu0 %vm218_vm0, %v87_v13  ;;  %v88_v15 = vsel %vm75_vm7, 1.0, %v2002_v2  ;;  %vm76_vm10 = vmand %vm50_vm8, %vm63_vm9  ;;  %vm66_vm4 = vcmp.lt.s32.totalorder %v40_v19, 10  ;;  %vm54_vm6 = vcmp.ge.s32.totalorder %v41_v22, 0  ;;  %vm67_vm7 = vcmp.lt.s32.totalorder %v41_v22, 10 }
   0xc   :  { %1687 = vmatprep.mubr.msk.f32.mxu0 %vm2003_vm1, %v2002_v2  ;;  %v89_v18 = vsel %vm76_vm10, 1.0, %v2002_v2  ;;  %vm77_vm13 = vmand %vm51_vm11, %vm64_vm12  ;;  %v2099_v26 = vadd.s32 64, %v2033_v3  ;;  %vm55_vm9 = vcmp.ge.s32.totalorder %v42_v25, 0  ;;  %vm68_vm10 = vcmp.lt.s32.totalorder %v42_v25, 10 }
   0xd   :  { %v90_v21 = vsel %vm77_vm13, 1.0, %v2002_v2  ;;  %vm78_vm2 = vmand %vm52_vm14, %vm65_vm15  ;;  %v2108_v29 = vadd.s32 72, %v2033_v3  ;;  %v2117_v32 = vadd.s32 80, %v2033_v3  ;;  %v2126_v35 = vadd.s32 88, %v2033_v3 }
   0xe   :  { %v91_v24 = vsel %vm78_vm2, 1.0, %v2002_v2  ;;  %vm79_vm5 = vmand %vm53_vm3, %vm66_vm4  ;;  %v43_v28 = vsub.s32 %v2099_v26, %v2042_v5  ;;  %v2135_v38 = vadd.s32 96, %v2033_v3  ;;  %v204_v44 = vmul.u32 8, %v2033_v3 }
   0xf   :  { %1688 = vmatmul.mubr.msk.f32.gmra.mrb[2].mxu0 %vm218_vm0, %v88_v15  ;;  %v92_v27 = vsel %vm79_vm5, 1.0, %v2002_v2  ;;  %vm80_vm8 = vmand %vm54_vm6, %vm67_vm7  ;;  %v44_v31 = vsub.s32 %v2108_v29, %v2042_v5  ;;  %v45_v34 = vsub.s32 %v2117_v32, %v2042_v5  ;;  %v46_v37 = vsub.s32 %v2126_v35, %v2042_v5 }
  0x10   :  { %1690 = vmatprep.mubr.msk.f32.mxu0 %vm2003_vm1, %v2002_v2  ;;  %v93_v30 = vsel %vm80_vm8, 1.0, %v2002_v2  ;;  %vm81_vm11 = vmand %vm55_vm9, %vm68_vm10  ;;  %vm56_vm12 = vcmp.ge.s32.totalorder %v43_v28, 0  ;;  %vm69_vm13 = vcmp.lt.s32.totalorder %v43_v28, 10  ;;  %v47_v40 = vsub.s32 %v2135_v38, %v2042_v5 }
  0x11   :  { %v94_v33 = vsel %vm81_vm11, 1.0, %v2002_v2  ;;  %vm82_vm14 = vmand %vm56_vm12, %vm69_vm13  ;;  %vm57_vm15 = vcmp.ge.s32.totalorder %v44_v31, 0  ;;  %vm70_vm2 = vcmp.lt.s32.totalorder %v44_v31, 10  ;;  %vm58_vm4 = vcmp.ge.s32.totalorder %v45_v34, 0 }
  0x12   :  { %v95_v36 = vsel %vm82_vm14, 1.0, %v2002_v2  ;;  %vm83_vm3 = vmand %vm57_vm15, %vm70_vm2  ;;  %vm71_vm5 = vcmp.lt.s32.totalorder %v45_v34, 10  ;;  %vm59_vm7 = vcmp.ge.s32.totalorder %v46_v37, 0  ;;  %vm72_vm8 = vcmp.lt.s32.totalorder %v46_v37, 10 }
  0x13   :  { %1691 = vmatmul.mubr.msk.f32.gmra.mrb[4].mxu0 %vm218_vm0, %v89_v18  ;;  %v96_v39 = vsel %vm83_vm3, 1.0, %v2002_v2  ;;  %vm84_vm6 = vmand %vm58_vm4, %vm71_vm5  ;;  %vm60_vm10 = vcmp.ge.s32.totalorder %v47_v40, 0  ;;  %vm73_vm11 = vcmp.lt.s32.totalorder %v47_v40, 10  ;;  %v205_v45 = vsub.s32 %v2035_v4, %v204_v44 }
  0x14   :  { %1693 = vmatprep.mubr.msk.f32.mxu0 %vm2003_vm1, %v2002_v2  ;;  %v97_v41 = vsel %vm84_vm6, 1.0, %v2002_v2  ;;  %vm85_vm9 = vmand %vm59_vm7, %vm72_vm8  ;;  %vm391_vm2 = vcmask 64512   ;;  %v100_v58 = vcvt.s32.f32 %v2033_v3  ;;  %v101_v63 = vcvt.s32.f32 %v2045_v6 }
  0x15   :  { %v98_v42 = vsel %vm85_vm9, 1.0, %v2002_v2  ;;  %vm86_vm12 = vmand %vm60_vm10, %vm73_vm11  ;;  %vm206_vm13 = vcmp.ge.s32.totalorder %v205_v45, 0  ;;  %vm207_vm14 = vcmp.lt.s32.totalorder %v205_v45, 8  ;;  %v102_v10 = vcvt.s32.f32 %v2048_v7 }
  0x16   :  { %v99_v43 = vsel %vm86_vm12, 1.0, %v2002_v2  ;;  %vm2160_vm15 = vmand %vm206_vm13, %vm207_vm14  ;;  %v113_v61 = vadd.f32 0.5, %v100_v58  ;;  %v114_v9 = vadd.f32 0.5, %v101_v63  ;;  %v103_v19 = vcvt.s32.f32 %v2057_v11 }
  0x17   :  { %1694 = vmatmul.mubr.msk.f32.gmra.mrb[6].mxu0 %vm218_vm0, %v90_v21  ;;  %1724 = vmatpush3.msk.msra.mxu1 %vm2160_vm15, %v2004_v47  ;;  %v115_v18 = vadd.f32 0.5, %v102_v10 }
  0x18   :  { %1696 = vmatprep.mubr.msk.f32.mxu0 %vm2003_vm1, %v2002_v2  ;;  %1764 = vmatprep.subr.mxu1 %v2002_v2  ;;  %v126_v5 = vmul.f32 0.1, %v113_v61  ;;  %v127_v16 = vmul.f32 0.1, %v114_v9  ;;  %v116_v28 = vadd.f32 0.5, %v103_v19 }
  0x1a   :  { %v1930_v14 = vtrunc.f32 %v126_v5  ;;  %v1932_v25 = vtrunc.f32 %v127_v16 }
  0x1b   :  { %1697 = vmatmul.mubr.msk.f32.gmra.mrb[8].mxu0 %vm218_vm0, %v91_v24 }
  0x1c   :  { %1699 = vmatprep.mubr.msk.f32.mxu0 %vm2003_vm1, %v2002_v2  ;;  %v1931_v22 = vcvt.f32.s32 %v1930_v14 }
  0x1f   :  { %1700 = vmatmul.mubr.msk.f32.gmra.mrb[10].mxu0 %vm218_vm0, %v92_v27  ;;  %v128_v27 = vmul.f32 0.1, %v115_v18 }
  0x20   :  { %1702 = vmatprep.mubr.msk.f32.mxu0 %vm2003_vm1, %v2002_v2 }
  0x21   :  { %v1934_v37 = vtrunc.f32 %v128_v27 }
  0x23   :  { %1703 = vmatmul.mubr.msk.f32.gmra.mrb[12].mxu0 %vm218_vm0, %v93_v30  ;;  %v104_v30 = vcvt.s32.f32 %v2060_v12 }
  0x24   :  { %1705 = vmatprep.mubr.msk.f32.mxu0 %vm2003_vm1, %v2002_v2 }
  0x25   :  { %v117_v40 = vadd.f32 0.5, %v104_v30 }
  0x27   :  { %1706 = vmatmul.mubr.msk.f32.gmra.mrb[14].mxu0 %vm218_vm0, %v94_v33  ;;  %v152_v33 = vmul.u32 10, %v1931_v22 }
  0x28   :  { %1708 = vmatprep.mubr.msk.f32.mxu0 %vm2003_vm1, %v2002_v2 }
  0x2b   :  { %1709 = vmatmul.mubr.msk.f32.gmra.mrb[16].mxu0 %vm218_vm0, %v95_v36  ;;  %v1933_v36 = vcvt.f32.s32 %v1932_v25  ;;  %v109_v25 = vcvt.s32.f32 %v2108_v29 }
  0x2c   :  { %1711 = vmatprep.mubr.msk.f32.mxu0 %vm2003_vm1, %v2002_v2 }
  0x2d   :  { %v153_v45 = vmul.u32 10, %v1933_v36  ;;  %v110_v36 = vcvt.s32.f32 %v2117_v32 }
  0x2f   :  { %1712 = vmatmul.mubr.msk.f32.gmra.mrb[18].mxu0 %vm218_vm0, %v96_v39  ;;  %v129_v39 = vmul.f32 0.1, %v116_v28 }
  0x30   :  { %1714 = vmatprep.mubr.msk.f32.mxu0 %vm2003_vm1, %v2002_v2 }
  0x33   :  { %1715 = vmatmul.mubr.msk.f32.gmra.mrb[20].mxu0 %vm218_vm0, %v97_v41  ;;  %v105_v41 = vcvt.s32.f32 %v2072_v17 }
  0x34   :  { %1717 = vmatprep.mubr.msk.f32.mxu0 %vm2003_vm1, %v2002_v2 }
  0x37   :  { %1718 = vmatmul.mubr.msk.f32.gmra.mrb[22].mxu0 %vm218_vm0, %v98_v42 }
  0x38   :  { %1720 = vmatprep.mubr.msk.f32.mxu0 %vm2003_vm1, %v2002_v2 }
  0x3b   :  { %1721 = vmatmul.mubr.msk.f32.gmra.mrb[24].mxu0 %vm218_vm0, %v99_v43  ;;  %v165_v43 = vsub.s32 %v2033_v3, %v152_v33 }
  0x3c   :  { %1807 = vmatprep.mubr.msk.f32.mxu0 %vm2003_vm1, %v2002_v2 }
  0x3d   :  { %vm178_vm3 = vcmp.eq.s32.totalorder %v165_v43, %v2035_v4  ;;  %v123_v43 = vadd.f32 0.5, %v110_v36 }
  0xde   :  { %v327_v49 = vpop.f32.mrb[0].mxu0 }
  0xdf   :  { %v1686_v50 = vpop.f32.mrb[1].mxu0  ;;  %1726 = vmatmul.mubr.msk.f32.vlgmr.msra.gmra.mrb[0].mxu1 %vm391_vm2, %v327_v49  ;;  %v1935_v49 = vcvt.f32.s32 %v1934_v37 }
  0xe0   :  { %1728 = vmatprep.mubr.msk.f32.mxu1 %vm2003_vm1, %v2002_v2  ;;  %1765 = vmatpush3.xpose.msk.msra.mxu1 %vm218_vm0, %v2171_v48  ;;  %v1936_v50 = vtrunc.f32 %v129_v39 }
  0xe2   :  { %v332_v51 = vpop.f32.mrb[2].mxu0  ;;  %v1937_v58 = vcvt.f32.s32 %v1936_v50 }
  0xe3   :  { %v1689_v52 = vpop.f32.mrb[3].mxu0  ;;  %1729 = vmatmul.mubr.msk.f32.gmra.mrb[2].mxu1 %vm391_vm2, %v332_v51  ;;  %v130_v51 = vmul.f32 0.1, %v117_v40 }
  0xe4   :  { %1731 = vmatprep.mubr.msk.f32.mxu1 %vm2003_vm1, %v2002_v2  ;;  %v118_v52 = vadd.f32 0.5, %v105_v41 }
  0xe6   :  { %v337_v53 = vpop.f32.mrb[4].mxu0 }
  0xe7   :  { %v1692_v54 = vpop.f32.mrb[5].mxu0  ;;  %1732 = vmatmul.mubr.msk.f32.gmra.mrb[4].mxu1 %vm391_vm2, %v337_v53  ;;  %v106_v53 = vcvt.s32.f32 %v2081_v20 }
  0xe8   :  { %1734 = vmatprep.mubr.msk.f32.mxu1 %vm2003_vm1, %v2002_v2 }
  0xe9   :  { %v119_v61 = vadd.f32 0.5, %v106_v53 }
  0xea   :  { %v342_v55 = vpop.f32.mrb[6].mxu0 }
  0xeb   :  { %v1695_v56 = vpop.f32.mrb[7].mxu0  ;;  %1735 = vmatmul.mubr.msk.f32.gmra.mrb[6].mxu1 %vm391_vm2, %v342_v55 }
  0xec   :  { %1737 = vmatprep.mubr.msk.f32.mxu1 %vm2003_vm1, %v2002_v2  ;;  %v166_v56 = vsub.s32 %v2045_v6, %v153_v45 }
  0xee   :  { %v347_v57 = vpop.f32.mrb[8].mxu0  ;;  %vm179_vm4 = vcmp.eq.s32.totalorder %v166_v56, %v2035_v4 }
  0xef   :  { %v1698_v59 = vpop.f32.mrb[9].mxu0  ;;  %1738 = vmatmul.mubr.msk.f32.gmra.mrb[8].mxu1 %vm391_vm2, %v347_v57  ;;  %v154_v57 = vmul.u32 10, %v1935_v49  ;;  %v192_v16 = vsel %vm179_vm4, 1.0, %v2002_v2 }
  0xf0   :  { %1740 = vmatprep.mubr.msk.f32.mxu1 %vm2003_vm1, %v2002_v2  ;;  %v1938_v59 = vtrunc.f32 %v130_v51 }
  0xf1   :  { %v167_v6 = vsub.s32 %v2048_v7, %v154_v57 }
  0xf2   :  { %v352_v60 = vpop.f32.mrb[10].mxu0  ;;  %v1939_v9 = vcvt.f32.s32 %v1938_v59 }
  0xf3   :  { %v1701_v62 = vpop.f32.mrb[11].mxu0  ;;  %1741 = vmatmul.mubr.msk.f32.gmra.mrb[10].mxu1 %vm391_vm2, %v352_v60  ;;  %v131_v60 = vmul.f32 0.1, %v118_v52  ;;  %vm180_vm5 = vcmp.eq.s32.totalorder %v167_v6, %v2035_v4  ;;  %v136_v52 = vmul.f32 0.1, %v123_v43 }
  0xf4   :  { %1743 = vmatprep.mubr.msk.f32.mxu1 %vm2003_vm1, %v2002_v2  ;;  %v107_v62 = vcvt.s32.f32 %v2090_v23  ;;  %v156_v19 = vmul.u32 10, %v1939_v9  ;;  %v193_v27 = vsel %vm180_vm5, 1.0, %v2002_v2  ;;  %vm915_vm5 = vcmask 818176  }
  0xf5   :  { %v1940_v10 = vtrunc.f32 %v131_v60 }
  0xf6   :  { %v357_v1 = vpop.f32.mrb[12].mxu0  ;;  %v120_v14 = vadd.f32 0.5, %v107_v62  ;;  %v169_v28 = vsub.s32 %v2060_v12, %v156_v19 }
  0xf7   :  { %v1704_v8 = vpop.f32.mrb[13].mxu0  ;;  %1744 = vmatmul.mubr.msk.f32.gmra.mrb[12].mxu1 %vm391_vm2, %v357_v1  ;;  %v191_v1 = vsel %vm178_vm3, 1.0, %v2002_v2  ;;  %v1941_v7 = vcvt.f32.s32 %v1940_v10 }
  0xf8   :  { %1746 = vmatprep.mubr.msk.f32.mxu1 %vm2003_vm1, %v2002_v2  ;;  %v155_v8 = vmul.u32 10, %v1937_v58  ;;  %v133_v22 = vmul.f32 0.1, %v120_v14  ;;  %vm182_vm7 = vcmp.eq.s32.totalorder %v169_v28, %v2035_v4  ;;  %v1950_v58 = vtrunc.f32 %v136_v52 }
  0xf9   :  { %v195_v45 = vsel %vm182_vm7, 1.0, %v2002_v2  ;;  %vm1004_vm7 = vcmask 1041408  }
  0xfa   :  { %v362_v13 = vpop.f32.mrb[14].mxu0  ;;  %v168_v18 = vsub.s32 %v2057_v11, %v155_v8  ;;  %v157_v11 = vmul.u32 10, %v1941_v7 }
  0xfb   :  { %v1707_v15 = vpop.f32.mrb[15].mxu0  ;;  %1747 = vmatmul.mubr.msk.f32.gmra.mrb[14].mxu1 %vm391_vm2, %v362_v13  ;;  %v132_v13 = vmul.f32 0.1, %v119_v61 }
  0xfc   :  { %1749 = vmatprep.mubr.msk.f32.mxu1 %vm2003_vm1, %v2002_v2  ;;  %v108_v15 = vcvt.s32.f32 %v2099_v26  ;;  %vm181_vm6 = vcmp.eq.s32.totalorder %v168_v18, %v2035_v4  ;;  %v170_v12 = vsub.s32 %v2072_v17, %v157_v11 }
  0xfd   :  { %v194_v37 = vsel %vm181_vm6, 1.0, %v2002_v2  ;;  %vm922_vm6 = vcmask 1043456  }
  0xfe   :  { %v367_v21 = vpop.f32.mrb[16].mxu0  ;;  %vm183_vm8 = vcmp.eq.s32.totalorder %v170_v12, %v2035_v4 }
  0xff   :  { %v1710_v24 = vpop.f32.mrb[17].mxu0  ;;  %1750 = vmatmul.mubr.msk.f32.gmra.mrb[16].mxu1 %vm391_vm2, %v367_v21  ;;  %v1942_v21 = vtrunc.f32 %v132_v13 }
 0x100   :  { %1752 = vmatprep.mubr.msk.f32.mxu1 %vm2003_vm1, %v2002_v2  ;;  %v121_v24 = vadd.f32 0.5, %v108_v15 }
 0x101   :  { %v1943_v30 = vcvt.f32.s32 %v1942_v21 }
 0x102   :  { %v372_v31 = vpop.f32.mrb[18].mxu0  ;;  %v134_v33 = vmul.f32 0.1, %v121_v24 }
 0x103   :  { %v1713_v34 = vpop.f32.mrb[19].mxu0  ;;  %1753 = vmatmul.mubr.msk.f32.gmra.mrb[18].mxu1 %vm391_vm2, %v372_v31  ;;  %v1944_v31 = vtrunc.f32 %v133_v22  ;;  %v158_v39 = vmul.u32 10, %v1943_v30 }
 0x104   :  { %1755 = vmatprep.mubr.msk.f32.mxu1 %vm2003_vm1, %v2002_v2  ;;  %v122_v34 = vadd.f32 0.5, %v109_v25  ;;  %v1946_v41 = vtrunc.f32 %v134_v33 }
 0x105   :  { %v1945_v40 = vcvt.f32.s32 %v1944_v31  ;;  %v171_v49 = vsub.s32 %v2081_v20, %v158_v39 }
 0x106   :  { %v377_v42 = vpop.f32.mrb[20].mxu0  ;;  %v1947_v17 = vcvt.f32.s32 %v1946_v41 }
 0x107   :  { %v1716_v44 = vpop.f32.mrb[21].mxu0  ;;  %1756 = vmatmul.mubr.msk.f32.gmra.mrb[20].mxu1 %vm391_vm2, %v377_v42  ;;  %v135_v42 = vmul.f32 0.1, %v122_v34  ;;  %v159_v50 = vmul.u32 10, %v1945_v40  ;;  %vm184_vm9 = vcmp.eq.s32.totalorder %v171_v49, %v2035_v4 }
 0x108   :  { %1758 = vmatprep.mubr.msk.f32.mxu1 %vm2003_vm1, %v2002_v2  ;;  %v111_v44 = vcvt.s32.f32 %v2126_v35  ;;  %v160_v57 = vmul.u32 10, %v1947_v17  ;;  %v197_v61 = vsel %vm184_vm9, 1.0, %v2002_v2 }
 0x109   :  { %v1948_v51 = vtrunc.f32 %v135_v42  ;;  %v172_v56 = vsub.s32 %v2090_v23, %v159_v50 }
 0x10a   :  { %v382_v54 = vpop.f32.mrb[22].mxu0  ;;  %v124_v53 = vadd.f32 0.5, %v111_v44  ;;  %v173_v62 = vsub.s32 %v2099_v26, %v160_v57 }
 0x10b   :  { %v1719_v55 = vpop.f32.mrb[23].mxu0  ;;  %1759 = vmatmul.mubr.msk.f32.gmra.mrb[22].mxu1 %vm391_vm2, %v382_v54  ;;  %v112_v54 = vcvt.s32.f32 %v2135_v38  ;;  %v1949_v20 = vcvt.f32.s32 %v1948_v51  ;;  %vm185_vm10 = vcmp.eq.s32.totalorder %v172_v56, %v2035_v4 }
 0x10c   :  { %1761 = vmatprep.mubr.msk.f32.mxu1 %vm2003_vm1, %v2002_v2  ;;  %v196_v55 = vsel %vm183_vm8, 1.0, %v2002_v2  ;;  %v137_v59 = vmul.f32 0.1, %v124_v53  ;;  %v198_v6 = vsel %vm185_vm10, 1.0, %v2002_v2  ;;  %vm186_vm11 = vcmp.eq.s32.totalorder %v173_v62, %v2035_v4 }
 0x10d   :  { %v125_v60 = vadd.f32 0.5, %v112_v54  ;;  %v199_v26 = vsel %vm186_vm11, 1.0, %v2002_v2  ;;  %vm2006_vm8 = vmmov 1   ;;  %vm1158_vm10 = vcmask 812032  }
 0x10e   :  { %v387_v63 = vpop.f32.mrb[24].mxu0  ;;  %vm1928_vm9 = vmpackc.low %vm1004_vm7, %vm2006_vm8 }
 0x10f   :  { %v1722_v5 = vpop.f32.mrb[25].mxu0  ;;  %1762 = vmatmul.mubr.msk.f32.gmra.mrb[24].mxu1 %vm391_vm2, %v387_v63  ;;  %v161_v63 = vmul.u32 10, %v1949_v20  ;;  %v138_v23 = vmul.f32 0.1, %v125_v60 }
 0x110   :  { %1766 = vmatprep.mubr.msk.f32.mxu1 %vm2003_vm1, %v2002_v2  ;;  %v1952_v5 = vtrunc.f32 %v137_v59 }
 0x111   :  { %v174_v8 = vsub.s32 %v2108_v29, %v161_v63  ;;  %v1954_v13 = vtrunc.f32 %v138_v23 }
 0x112   :  { %v1953_v10 = vcvt.f32.s32 %v1952_v5 }
 0x113   :  { %1767 = vmatmul.mubr.msk.f32.vlgmr.msra.gmra.mrb[26].mxu1 %vm218_vm0, %v191_v1  ;;  %v1951_v1 = vcvt.f32.s32 %v1950_v58  ;;  %vm187_vm12 = vcmp.eq.s32.totalorder %v174_v8, %v2035_v4 }
 0x114   :  { %1769 = vmatprep.mubr.msk.f32.mxu1 %vm2003_vm1, %v2002_v2  ;;  %v163_v15 = vmul.u32 10, %v1953_v10  ;;  %v200_v29 = vsel %vm187_vm12, 1.0, %v2002_v2 }
 0x115   :  { %v162_v9 = vmul.u32 10, %v1951_v1 }
 0x116   :  { %v176_v18 = vsub.s32 %v2126_v35, %v163_v15 }
 0x117   :  { %1770 = vmatmul.mubr.msk.f32.gmra.mrb[28].mxu1 %vm218_vm0, %v192_v16  ;;  %v175_v14 = vsub.s32 %v2117_v32, %v162_v9  ;;  %v1955_v16 = vcvt.f32.s32 %v1954_v13 }
 0x118   :  { %1772 = vmatprep.mubr.msk.f32.mxu1 %vm2003_vm1, %v2002_v2  ;;  %vm189_vm14 = vcmp.eq.s32.totalorder %v176_v18, %v2035_v4 }
 0x119   :  { %vm188_vm13 = vcmp.eq.s32.totalorder %v175_v14, %v2035_v4  ;;  %v164_v19 = vmul.u32 10, %v1955_v16  ;;  %v202_v21 = vsel %vm189_vm14, 1.0, %v2002_v2 }
 0x11a   :  { %v201_v32 = vsel %vm188_vm13, 1.0, %v2002_v2 }
 0x11b   :  { %1773 = vmatmul.mubr.msk.f32.gmra.mrb[30].mxu1 %vm218_vm0, %v193_v27  ;;  %v177_v7 = vsub.s32 %v2135_v38, %v164_v19  ;;  %v210_v38 = vcvt.s32.f32 %v2035_v4 }
 0x11c   :  { %1775 = vmatprep.mubr.msk.f32.mxu1 %vm2003_vm1, %v2002_v2 }
 0x11d   :  { %vm190_vm3 = vcmp.eq.s32.totalorder %v177_v7, %v2035_v4  ;;  %v211_v22 = vadd.f32 0.5, %v210_v38 }
 0x11e   :  { %v203_v35 = vsel %vm190_vm3, 1.0, %v2002_v2 }
 0x11f   :  { %1776 = vmatmul.mubr.msk.f32.gmra.mrb[32].mxu1 %vm218_vm0, %v194_v37  ;;  %v212_v24 = vmul.f32 0.125, %v211_v22  ;;  %v2381_v22 = vld [vmem:[%s2472_s1 + $0x18] sm:$0xff] }
 0x120   :  { %1778 = vmatprep.mubr.msk.f32.mxu1 %vm2003_vm1, %v2002_v2 }
 0x121   :  { %v1956_v25 = vtrunc.f32 %v212_v24 }
 0x123   :  { %1779 = vmatmul.mubr.msk.f32.gmra.mrb[34].mxu1 %vm218_vm0, %v195_v45  ;;  %v1957_v27 = vcvt.f32.s32 %v1956_v25 }
 0x124   :  { %1781 = vmatprep.mubr.msk.f32.mxu1 %vm2003_vm1, %v2002_v2 }
 0x125   :  { %v214_v28 = vmul.u32 8, %v1957_v27 }
 0x127   :  { %1782 = vmatmul.mubr.msk.f32.gmra.mrb[36].mxu1 %vm218_vm0, %v196_v55  ;;  %v2305_v11 = vsub.s32 %v2035_v4, %v214_v28 }
 0x128   :  { %1784 = vmatprep.mubr.msk.f32.mxu1 %vm2003_vm1, %v2002_v2 }
 0x129   :  { %vm216_vm4 = vcmp.eq.s32.totalorder %v2305_v11, %v2033_v3 }
 0x12a   :  { %1806 = vmatpush3.msk.msra.mxu0 %vm216_vm4, %v2004_v47 }
 0x12b   :  { %1785 = vmatmul.mubr.msk.f32.gmra.mrb[38].mxu1 %vm218_vm0, %v197_v61 }
 0x12c   :  { %1787 = vmatprep.mubr.msk.f32.mxu1 %vm2003_vm1, %v2002_v2 }
 0x12f   :  { %1788 = vmatmul.mubr.msk.f32.gmra.mrb[40].mxu1 %vm218_vm0, %v198_v6 }
 0x130   :  { %1790 = vmatprep.mubr.msk.f32.mxu1 %vm2003_vm1, %v2002_v2 }
 0x133   :  { %1791 = vmatmul.mubr.msk.f32.gmra.mrb[42].mxu1 %vm218_vm0, %v199_v26 }
 0x134   :  { %1793 = vmatprep.mubr.msk.f32.mxu1 %vm2003_vm1, %v2002_v2 }
 0x137   :  { %1794 = vmatmul.mubr.msk.f32.gmra.mrb[44].mxu1 %vm218_vm0, %v200_v29 }
 0x138   :  { %1796 = vmatprep.mubr.msk.f32.mxu1 %vm2003_vm1, %v2002_v2 }
 0x13b   :  { %1797 = vmatmul.mubr.msk.f32.gmra.mrb[46].mxu1 %vm218_vm0, %v201_v32 }
 0x13c   :  { %1799 = vmatprep.mubr.msk.f32.mxu1 %vm2003_vm1, %v2002_v2 }
 0x13f   :  { %1800 = vmatmul.mubr.msk.f32.gmra.mrb[48].mxu1 %vm218_vm0, %v202_v21 }
 0x140   :  { %1802 = vmatprep.mubr.msk.f32.mxu1 %vm2003_vm1, %v2002_v2 }
 0x143   :  { %1803 = vmatmul.mubr.msk.f32.gmra.mrb[50].mxu1 %vm218_vm0, %v203_v35 }
 0x144   :  { %1872 = vmatprep.mubr.msk.f32.mxu1 %vm915_vm5, %v2381_v22 }
 0x1b2   :  { %v2313_v30 = vpop.f32.mrb[0].mxu1 }
 0x1b3   :  { %v1727_v31 = vpop.f32.mrb[1].mxu1 }
 0x1b6   :  { %v2315_v33 = vpop.f32.mrb[2].mxu1 }
 0x1b7   :  { %v1730_v34 = vpop.f32.mrb[3].mxu1 }
 0x1ba   :  { %v2317_v36 = vpop.f32.mrb[4].mxu1 }
 0x1bb   :  { %v1733_v37 = vpop.f32.mrb[5].mxu1 }
 0x1be   :  { %v2319_v12 = vpop.f32.mrb[6].mxu1 }
 0x1bf   :  { %v1736_v4 = vpop.f32.mrb[7].mxu1 }
 0x1c2   :  { %v2321_v39 = vpop.f32.mrb[8].mxu1 }
 0x1c3   :  { %v1739_v40 = vpop.f32.mrb[9].mxu1 }
 0x1c6   :  { %v2323_v41 = vpop.f32.mrb[10].mxu1 }
 0x1c7   :  { %v1742_v42 = vpop.f32.mrb[11].mxu1 }
 0x1ca   :  { %v2325_v43 = vpop.f32.mrb[12].mxu1 }
 0x1cb   :  { %v1745_v44 = vpop.f32.mrb[13].mxu1 }
 0x1ce   :  { %v2327_v45 = vpop.f32.mrb[14].mxu1 }
 0x1cf   :  { %v1748_v49 = vpop.f32.mrb[15].mxu1 }
 0x1d2   :  { %v2329_v50 = vpop.f32.mrb[16].mxu1 }
 0x1d3   :  { %v1751_v17 = vpop.f32.mrb[17].mxu1 }
 0x1d6   :  { %v2331_v51 = vpop.f32.mrb[18].mxu1 }
 0x1d7   :  { %v1754_v52 = vpop.f32.mrb[19].mxu1 }
 0x1da   :  { %v2333_v53 = vpop.f32.mrb[20].mxu1 }
 0x1db   :  { %v1757_v54 = vpop.f32.mrb[21].mxu1 }
 0x1de   :  { %v2335_v55 = vpop.f32.mrb[22].mxu1 }
 0x1df   :  { %v1760_v56 = vpop.f32.mrb[23].mxu1 }
 0x1e2   :  { %v2337_v57 = vpop.f32.mrb[24].mxu1 }
 0x1e3   :  { %v1763_v20 = vpop.f32.mrb[25].mxu1 }
 0x1e6   :  { %v669_v58 = vpop.f32.mrb[26].mxu1 }
 0x1e7   :  { %v1768_v59 = vpop.f32.mrb[27].mxu1  ;;  %1808 = vmatmul.mubr.msk.f32.vlgmr.msra.gmra.mrb[26].mxu0 %vm391_vm2, %v669_v58 }
 0x1e8   :  { %1810 = vmatprep.mubr.msk.f32.mxu0 %vm2003_vm1, %v2002_v2 }
 0x1ea   :  { %v674_v60 = vpop.f32.mrb[28].mxu1 }
 0x1eb   :  { %v1771_v61 = vpop.f32.mrb[29].mxu1  ;;  %1811 = vmatmul.mubr.msk.f32.gmra.mrb[28].mxu0 %vm391_vm2, %v674_v60 }
 0x1ec   :  { %1813 = vmatprep.mubr.msk.f32.mxu0 %vm2003_vm1, %v2002_v2 }
 0x1ee   :  { %v679_v62 = vpop.f32.mrb[30].mxu1 }
 0x1ef   :  { %v1774_v63 = vpop.f32.mrb[31].mxu1  ;;  %1814 = vmatmul.mubr.msk.f32.gmra.mrb[30].mxu0 %vm391_vm2, %v679_v62 }
 0x1f0   :  { %1816 = vmatprep.mubr.msk.f32.mxu0 %vm2003_vm1, %v2002_v2 }
 0x1f2   :  { %v684_v1 = vpop.f32.mrb[32].mxu1 }
 0x1f3   :  { %v1777_v5 = vpop.f32.mrb[33].mxu1  ;;  %1817 = vmatmul.mubr.msk.f32.gmra.mrb[32].mxu0 %vm391_vm2, %v684_v1 }
 0x1f4   :  { %1819 = vmatprep.mubr.msk.f32.mxu0 %vm2003_vm1, %v2002_v2 }
 0x1f6   :  { %v689_v23 = vpop.f32.mrb[34].mxu1 }
 0x1f7   :  { %v1780_v6 = vpop.f32.mrb[35].mxu1  ;;  %1820 = vmatmul.mubr.msk.f32.gmra.mrb[34].mxu0 %vm391_vm2, %v689_v23 }
 0x1f8   :  { %1822 = vmatprep.mubr.msk.f32.mxu0 %vm2003_vm1, %v2002_v2 }
 0x1fa   :  { %v694_v8 = vpop.f32.mrb[36].mxu1 }
 0x1fb   :  { %v1783_v9 = vpop.f32.mrb[37].mxu1  ;;  %1823 = vmatmul.mubr.msk.f32.gmra.mrb[36].mxu0 %vm391_vm2, %v694_v8 }
 0x1fc   :  { %1825 = vmatprep.mubr.msk.f32.mxu0 %vm2003_vm1, %v2002_v2 }
 0x1fe   :  { %v699_v10 = vpop.f32.mrb[38].mxu1 }
 0x1ff   :  { %v1786_v13 = vpop.f32.mrb[39].mxu1  ;;  %1826 = vmatmul.mubr.msk.f32.gmra.mrb[38].mxu0 %vm391_vm2, %v699_v10 }
 0x200   :  { %1828 = vmatprep.mubr.msk.f32.mxu0 %vm2003_vm1, %v2002_v2 }
 0x202   :  { %v704_v26 = vpop.f32.mrb[40].mxu1 }
 0x203   :  { %v1789_v14 = vpop.f32.mrb[41].mxu1  ;;  %1829 = vmatmul.mubr.msk.f32.gmra.mrb[40].mxu0 %vm391_vm2, %v704_v26 }
 0x204   :  { %1831 = vmatprep.mubr.msk.f32.mxu0 %vm2003_vm1, %v2002_v2 }
 0x206   :  { %v709_v15 = vpop.f32.mrb[42].mxu1 }
 0x207   :  { %v1792_v16 = vpop.f32.mrb[43].mxu1  ;;  %1832 = vmatmul.mubr.msk.f32.gmra.mrb[42].mxu0 %vm391_vm2, %v709_v15 }
 0x208   :  { %1834 = vmatprep.mubr.msk.f32.mxu0 %vm2003_vm1, %v2002_v2 }
 0x20a   :  { %v714_v29 = vpop.f32.mrb[44].mxu1 }
 0x20b   :  { %v1795_v18 = vpop.f32.mrb[45].mxu1  ;;  %1835 = vmatmul.mubr.msk.f32.gmra.mrb[44].mxu0 %vm391_vm2, %v714_v29 }
 0x20c   :  { %1837 = vmatprep.mubr.msk.f32.mxu0 %vm2003_vm1, %v2002_v2 }
 0x20e   :  { %v719_v19 = vpop.f32.mrb[46].mxu1 }
 0x20f   :  { %v1798_v32 = vpop.f32.mrb[47].mxu1  ;;  %1838 = vmatmul.mubr.msk.f32.gmra.mrb[46].mxu0 %vm391_vm2, %v719_v19 }
 0x210   :  { %1840 = vmatprep.mubr.msk.f32.mxu0 %vm2003_vm1, %v2002_v2 }
 0x212   :  { %v724_v7 = vpop.f32.mrb[48].mxu1 }
 0x213   :  { %v1801_v21 = vpop.f32.mrb[49].mxu1  ;;  %1841 = vmatmul.mubr.msk.f32.gmra.mrb[48].mxu0 %vm391_vm2, %v724_v7 }
 0x214   :  { %1843 = vmatprep.mubr.msk.f32.mxu0 %vm2003_vm1, %v2002_v2  ;;  %v1117_v21 = vmul.f32 %v2026_v0, %v2026_v0 }
 0x216   :  { %v729_v35 = vpop.f32.mrb[50].mxu1 }
 0x217   :  { %1844 = vmatmul.mubr.msk.f32.gmra.mrb[50].mxu0 %vm391_vm2, %v729_v35  ;;  %v1804_v38 = vpop.f32.mrb[51].mxu1 }
 0x218   :  { %1879 = vmatprep.mubr.msk.f32.mxu0 %vm2003_vm1, %v2002_v2  ;;  %v1118_v38 = vsel %vm218_vm0, %v1117_v21, 0.0 }
 0x2ba   :  { %v838_v24 = vpop.f32.mrb[26].mxu0 }
 0x2bb   :  { %v902_v25 = vmul.f32 %v838_v24, %v2313_v30  ;;  %v1809_v27 = vpop.f32.mrb[27].mxu0  ;;  %v1153_v24 = vmul.f32 %v2381_v22, %v2381_v22 }
 0x2bd   :  { %v1155_v27 = vsel %vm915_vm5, %v1153_v24, 0.0 }
 0x2be   :  { %v843_v28 = vpop.f32.mrb[28].mxu0 }
 0x2bf   :  { %v903_v31 = vmul.f32 %v843_v28, %v2315_v33  ;;  %v1812_v34 = vpop.f32.mrb[29].mxu0 }
 0x2c1   :  { %v1902_v37 = vpack.c.bf16 %v903_v31, %v902_v25 }
 0x2c2   :  { %v848_v4 = vpop.f32.mrb[30].mxu0 }
 0x2c3   :  { %v904_v40 = vmul.f32 %v848_v4, %v2317_v36  ;;  %v1815_v42 = vpop.f32.mrb[31].mxu0  ;;  %1903 = vmatprep.subr.bf16.mxu1 %v1902_v37 }
 0x2c4   :  { %1905 = vmatpush3.bf16.msra.mxu1 %v1902_v37 }
 0x2c6   :  { %v853_v44 = vpop.f32.mrb[32].mxu0 }
 0x2c7   :  { %v905_v49 = vmul.f32 %v853_v44, %v2319_v12  ;;  %v1818_v17 = vpop.f32.mrb[33].mxu0 }
 0x2c9   :  { %v1906_v52 = vpack.c.bf16 %v905_v49, %v904_v40 }
 0x2ca   :  { %v858_v54 = vpop.f32.mrb[34].mxu0 }
 0x2cb   :  { %v906_v30 = vmul.f32 %v858_v54, %v2321_v39  ;;  %v1821_v56 = vpop.f32.mrb[35].mxu0  ;;  %1907 = vmatprep.subr.bf16.mxu1 %v1906_v52 }
 0x2cc   :  { %1909 = vmatpush3.bf16.msra.mxu1 %v1906_v52  ;;  %v209_v56 = vsel %vm2160_vm15, 1.0, %v2002_v2 }
 0x2ce   :  { %v863_v33 = vpop.f32.mrb[36].mxu0 }
 0x2cf   :  { %v907_v20 = vmul.f32 %v863_v33, %v2323_v41  ;;  %v1824_v58 = vpop.f32.mrb[37].mxu0 }
 0x2d1   :  { %v1910_v59 = vpack.c.bf16 %v907_v20, %v906_v30  ;;  %v1420_v30 = vsub.s32 0, %v2033_v3 }
 0x2d2   :  { %v868_v36 = vpop.f32.mrb[38].mxu0 }
 0x2d3   :  { %v908_v60 = vmul.f32 %v868_v36, %v2325_v43  ;;  %v1827_v61 = vpop.f32.mrb[39].mxu0  ;;  %1911 = vmatprep.subr.bf16.mxu1 %v1910_v59  ;;  %v1181_v36 = vld [vmem:[%s2472_s1 + $0x10] sm:$0xff] }
 0x2d4   :  { %1913 = vmatpush3.bf16.msra.mxu1 %v1910_v59 }
 0x2d6   :  { %v873_v12 = vpop.f32.mrb[40].mxu0 }
 0x2d7   :  { %v909_v62 = vmul.f32 %v873_v12, %v2327_v45  ;;  %v1830_v63 = vpop.f32.mrb[41].mxu0 }
 0x2d9   :  { %v1914_v1 = vpack.c.bf16 %v909_v62, %v908_v60 }
 0x2da   :  { %v878_v39 = vpop.f32.mrb[42].mxu0 }
 0x2db   :  { %v910_v5 = vmul.f32 %v878_v39, %v2329_v50  ;;  %v1833_v23 = vpop.f32.mrb[43].mxu0  ;;  %1915 = vmatprep.subr.bf16.mxu1 %v1914_v1 }
 0x2dc   :  { %1917 = vmatpush3.bf16.msra.mxu1 %v1914_v1 }
 0x2de   :  { %v883_v41 = vpop.f32.mrb[44].mxu0 }
 0x2df   :  { %v911_v6 = vmul.f32 %v883_v41, %v2331_v51  ;;  %v1836_v8 = vpop.f32.mrb[45].mxu0  ;;  %v17_v51 = vld [vmem:[%s2472_s1 + $0x20] sm:$0x3] }
 0x2e0   :  { %v1154_v7 = vmul.f32 %v17_v51, %v17_v51 }
 0x2e1   :  { %v1918_v9 = vpack.c.bf16 %v911_v6, %v910_v5 }
 0x2e2   :  { %v888_v43 = vpop.f32.mrb[46].mxu0  ;;  %v1159_v35 = vsel %vm1158_vm10, %v1154_v7, 0.0 }
 0x2e3   :  { %v912_v10 = vmul.f32 %v888_v43, %v2333_v53  ;;  %v1839_v13 = vpop.f32.mrb[47].mxu0  ;;  %1919 = vmatprep.subr.bf16.mxu1 %v1918_v9  ;;  %v2005_v53 = vmov 0.0|0.0   ;;  %1160 = vadd.xlane.f32.xlu1 %v1159_v35 }
 0x2e4   :  { %1921 = vmatpush3.bf16.msra.mxu1 %v1918_v9  ;;  %1926 = vmatprep.subr.bf16.mxu0 %v2005_v53 }
 0x2e6   :  { %v893_v45 = vpop.f32.mrb[48].mxu0 }
 0x2e7   :  { %v913_v26 = vmul.f32 %v893_v45, %v2335_v55  ;;  %v1842_v14 = vpop.f32.mrb[49].mxu0  ;;  %v12_v55 = vld [vmem:[%s2471_s0] sm:$0xff] }
 0x2e8   :  { %v1100_v11 = vmul.f32 %v12_v55, %v12_v55 }
 0x2e9   :  { %v1922_v15 = vpack.c.bf16 %v913_v26, %v912_v10 }
 0x2ea   :  { %v898_v50 = vpop.f32.mrb[50].mxu0  ;;  %v1101_v32 = vsel %vm218_vm0, %v1100_v11, 0.0 }
 0x2eb   :  { %v914_v16 = vmul.f32 %v898_v50, %v2337_v57  ;;  %1923 = vmatprep.subr.bf16.mxu1 %v1922_v15  ;;  %v1845_v29 = vpop.f32.mrb[51].mxu0  ;;  %1102 = vadd.xlane.f32.xlu0 %v1101_v32 }
 0x2ec   :  { %1925 = vmatpush3.bf16.msra.mxu1 %v1922_v15 }
 0x2ed   :  { %1870 = vmatprep.subr.msk.mxu1 %vm922_vm6, %v914_v16 }
 0x2ef   :  { %1119 = vadd.xlane.f32.xlu0 %v1118_v38 }
 0x2f0   :  { %1871 = vmatpush3.msk.msra.mxu1 %vm922_vm6, %v914_v16 }
 0x2f1   :  { %1873 = vmatmul.mubr.msk.f32.vlgmr.msra.gmra.mrb[52].mxu1 %vm915_vm5, %v17_v51  ;;  %1882 = vmatprep.subr.mxu1 %v2002_v2 }
 0x2f2   :  { %1884 = vmatprep.mubr.msk.f32.mxu1 %vm2003_vm1, %v2002_v2 }
 0x2f3   :  { %1156 = vadd.xlane.f32.xlu0 %v1155_v27 }
 0x2f7   :  { %1883 = vmatpush3.xpose.msk.msra.mxu1 %vm218_vm0, %v12_v55 }
 0x2f8   :  { %1892 = vmatprep.subr.mxu1 %v2002_v2 }
 0x2fa   :  { %1885 = vmatmul.mubr.msk.f32.vlgmr.msra.gmra.mrb[54].mxu1 %vm218_vm0, %v12_v55 }
 0x2fb   :  { %1893 = vmatpush3.msk.msra.mxu1 %vm216_vm4, %v2004_v47  ;;  %1894 = vmatprep.mubr.msk.f32.mxu1 %vm2003_vm1, %v2002_v2 }
 0x378   :  { %v1103_v46 = vpop.xlane.xlu0 %1102 }
 0x379   :  { %v1104_v1 = vrot.slane %v1103_v46, 4 }
 0x37b   :  { %v1105_v6 = vadd.f32 %v1104_v1, %v1103_v46 }
 0x37c   :  { %v1120_v63 = vpop.xlane.xlu0 %1119 }
 0x37d   :  { %v1121_v39 = vrot.slane %v1120_v63, 4  ;;  %v1106_v10 = vrot.slane %v1105_v6, 2 }
 0x37f   :  { %v1122_v9 = vadd.f32 %v1121_v39, %v1120_v63  ;;  %v1107_v14 = vadd.f32 %v1106_v10, %v1105_v6 }
 0x380   :  { %v1157_v41 = vpop.xlane.xlu0 %1156 }
 0x381   :  { %v1123_v45 = vrot.slane %v1122_v9, 2  ;;  %v1108_v53 = vrot.slane %v1107_v14, 1 }
 0x383   :  { %v1124_v50 = vadd.f32 %v1123_v45, %v1122_v9  ;;  %v1109_v32 = vadd.f32 %v1108_v53, %v1107_v14 }
 0x385   :  { %1964 = vrsqrt.f32 %v1109_v32  ;;  %vm1112_vm15 = vcmp.eq.f32.partialorder %v1109_v32, inf  ;;  %vm1114_vm11 = vcmp.eq.f32.partialorder %v1109_v32, 0.0 }
 0x3c4   :  { %v1874_v57 = vpop.f32.mrb[52].mxu1 }
 0x3c5   :  { %v992_v18 = vpop.f32.mrb[53].mxu1 }
 0x3c6   :  { %v1927_v19 = vpack.c.bf16 %v1874_v57, %v992_v18  ;;  %v1125_v18 = vrot.slane %v1124_v50, 1 }
 0x3c8   :  { %1929 = vmatpush3.bf16.msk.msra.mxu0 %vm1928_vm9, %v1927_v19  ;;  %v1126_v35 = vadd.f32 %v1125_v18, %v1124_v50 }
 0x3c9   :  { %1887 = vmatprep.subr.mxu0 %v2002_v2 }
 0x3ca   :  { %1966 = vrsqrt.f32 %v1126_v35  ;;  %vm1131_vm12 = vcmp.eq.f32.partialorder %v1126_v35, 0.0 }
 0x3cb   :  { %1880 = vmatmul.mubr.msk.f32.vlgmr.msra.gmra.mrb[52].mxu0 %vm218_vm0, %v12_v55 }
 0x3cc   :  { %1889 = vmatprep.mubr.msk.f32.mxu0 %vm2003_vm1, %v2002_v2 }
 0x3cd   :  { %v1248_v28 = vpop.f32.mrb[54].mxu1 }
 0x3ce   :  { %v1886_v34 = vpop.f32.mrb[55].mxu1 }
 0x3d1   :  { %1888 = vmatpush3.xpose.msk.msra.mxu0 %vm218_vm0, %v2026_v0  ;;  %v1180_v0 = vld [vmem:[%s2472_s1 + $0x8] sm:$0xff] }
 0x3d2   :  { %1897 = vmatprep.subr.mxu0 %v2002_v2  ;;  %v1252_v31 = vsub.f32 %v1180_v0, %v1248_v28 }
 0x3d4   :  { %1890 = vmatmul.mubr.msk.f32.vlgmr.msra.gmra.mrb[54].mxu0 %vm218_vm0, %v2004_v47  ;;  %v1135_v47 = vmul.f32 %v2171_v48, %v2171_v48  ;;  %v1253_v37 = vmul.f32 %v1252_v31, %v1252_v31  ;;  %v15_v48 = vld [vmem:[%s2472_s1] sm:$0xff]  ;;  %s2007_s1 = smov [#allocation2]  }
 0x3d5   :  { %1899 = vmatprep.mubr.msk.f32.mxu0 %vm2003_vm1, %v2002_v2  ;;  %vm1080_vm1 = vcmp.ne.f32.partialorder %v15_v48, 0.0  ;;  %v1161_v2 = vpop.xlane.xlu1 %1160  ;;  %s1524_s24 = sshll.u32 %s2007_s1, 4  ;;  %s1525_s24 = int_to_ptr.vmem [resolvable:$true] %s1524_s24 }
 0x3d6   :  { %v1136_v25 = vsel %vm218_vm0, %v1135_v47, 0.0  ;;  %v1254_v4 = vsel %vm391_vm2, %v1253_v37, 0.0  ;;  %vm1078_vm0 = vcmask 523264   ;;  %v1162_v23 = vsel %vm1004_vm7, %v1161_v2, 0.0  ;;  %s1978_s25 = scalar_lea.vmem %s1525_s24, 128  ;;  %p1983_p1 = scmp.lt.s32.totalorder %s1525_s24, %s1525_s24 }
 0x3d7   :  { %1137 = vadd.xlane.f32.xlu1 %v1136_v25  ;;  %1255 = vadd.xlane.f32.xlu0 %v1254_v4  ;;  %v1163_v43 = vadd.f32 %v1162_v23, %v1157_v41  ;;  %p1979_p0 = scmp.ne.s32.totalorder %s1525_s24, %s1978_s25  ;;  %p1984_p2 = scmp.lt.s32.totalorder %s1978_s25, %s1978_s25 }
 0x3d9   :  { %v1164_v26 = vrot.slane %v1163_v43, 4  ;;  %p1985_p3 = por %p1984_p2, %p1983_p1 }
 0x3db   :  { %v1165_v16 = vadd.f32 %v1164_v26, %v1163_v43  ;;  %p1986_p4 = pnand %p1985_p3, %p1979_p0 }
 0x3dd   :  { %v1166_v19 = vrot.slane %v1165_v16, 2 }
 0x3df   :  { %v1167_v38 = vadd.f32 %v1166_v19, %v1165_v16 }
 0x3e1   :  { %v1168_v27 = vrot.slane %v1167_v38, 1 }
 0x3e3   :  { %v1169_v31 = vadd.f32 %v1168_v27, %v1167_v38 }
 0x3e5   :  { %vm1172_vm3 = vcmp.eq.f32.partialorder %v1169_v31, inf  ;;  %vm1174_vm4 = vcmp.eq.f32.partialorder %v1169_v31, 0.0 }
 0x464   :  { %v1138_v5 = vpop.xlane.xlu1 %1137  ;;  %v1256_v29 = vpop.xlane.xlu0 %1255 }
 0x465   :  { %v1139_v8 = vrot.slane %v1138_v5, 4  ;;  %v1257_v57 = vrot.slane %v1256_v29, 4 }
 0x467   :  { %v1140_v13 = vadd.f32 %v1139_v8, %v1138_v5  ;;  %v1258_v21 = vadd.f32 %v1257_v57, %v1256_v29  ;;  %v1175_v5 = vand.u32 2147483648, %v1169_v31 }
 0x469   :  { %v1141_v15 = vrot.slane %v1140_v13, 2  ;;  %v1259_v25 = vrot.slane %v1258_v21, 2 }
 0x46b   :  { %v1142_v55 = vadd.f32 %v1141_v15, %v1140_v13 }
 0x46d   :  { %v1143_v7 = vrot.slane %v1142_v55, 1 }
 0x46f   :  { %v1144_v24 = vadd.f32 %v1143_v7, %v1142_v55 }
 0x471   :  { %1968 = vrsqrt.f32 %v1144_v24  ;;  %vm1147_vm13 = vcmp.eq.f32.partialorder %v1144_v24, inf  ;;  %vm1149_vm14 = vcmp.eq.f32.partialorder %v1144_v24, 0.0 }
 0x472   :  { %1970 = vrsqrt.f32 %v1169_v31 }
 0x49e   :  { %v1074_v22 = vpop.f32.mrb[52].mxu0 }
 0x49f   :  { %1079 = vst.msk [vmem:[#allocation2] sm:$0xff] %vm1078_vm0, %v1074_v22  ;;  %v1081_v40 = vsub.f32 %v1074_v22, %v15_v48  ;;  %v1881_v42 = vpop.f32.mrb[53].mxu0  ;;  %v1965_v48 = vpop.eup %1964 }
 0x4a0   :  { %v1967_v22 = vpop.eup %1966 }
 0x4a1   :  { %v1082_v44 = vsel %vm1080_vm1, %v1081_v40, 0.0 }
 0x4a2   :  { %v1083_v49 = vmul.f32 %v1082_v44, %v1082_v44  ;;  %v1969_v44 = vpop.eup %1968 }
 0x4a4   :  { %v1084_v17 = vsel %vm1078_vm0, %v1083_v49, 0.0  ;;  %v1111_v49 = vmul.f32 %v1965_v48, %v1109_v32 }
 0x4a5   :  { %1085 = vadd.xlane.f32.xlu1 %v1084_v17  ;;  %v1128_v17 = vmul.f32 %v1967_v22, %v1126_v35 }
 0x4a7   :  { %v1341_v52 = vpop.f32.mrb[54].mxu0 }
 0x4a8   :  { %1895 = vmatmul.mubr.msk.f32.vlgmr.msra.gmra.mrb[56].mxu1 %vm391_vm2, %v1341_v52  ;;  %v1891_v54 = vpop.f32.mrb[55].mxu0  ;;  %v1115_v52 = vand.u32 2147483648, %v1109_v32 }
 0x532   :  { %v1086_v51 = vpop.xlane.xlu1 %1085 }
 0x533   :  { %v1087_v11 = vrot.slane %v1086_v51, 4 }
 0x535   :  { %v1088_v47 = vadd.f32 %v1087_v11, %v1086_v51 }
 0x537   :  { %v1089_v0 = vrot.slane %v1088_v47, 2 }
 0x539   :  { %v1090_v34 = vadd.f32 %v1089_v0, %v1088_v47 }
 0x53b   :  { %v1091_v4 = vrot.slane %v1090_v34, 1 }
 0x53d   :  { %v1092_v42 = vadd.f32 %v1091_v4, %v1090_v34 }
 0x53f   :  { %vm1095_vm6 = vcmp.eq.f32.partialorder %v1092_v42, inf  ;;  %v1098_v50 = vand.u32 2147483648, %v1092_v42  ;;  %vm1097_vm8 = vcmp.eq.f32.partialorder %v1092_v42, 0.0 }
 0x57b   :  { %v1414_v33 = vpop.f32.mrb[56].mxu1 }
 0x57c   :  { %v1421_v20 = vrot.slane %v1414_v33, %v1420_v30  ;;  %v1896_v58 = vpop.f32.mrb[57].mxu1  ;;  %v1132_v30 = vand.u32 2147483648, %v1126_v35 }
 0x57e   :  { %v1422_v59 = vmul.f32 %v1421_v20, %v209_v56  ;;  %v1146_v56 = vmul.f32 %v1969_v44, %v1144_v24  ;;  %v1113_v20 = vsel %vm1112_vm15, %v1109_v32, %v1111_v49 }
 0x580   :  { %1898 = vmatpush3.msra.mxu0 %v1422_v59  ;;  %v1971_v59 = vpop.eup %1970 }
 0x581   :  { %1900 = vmatmul.mubr.msk.f32.vlgmr.msra.gmra.mrb[56].mxu0 %vm391_vm2, %v1248_v28  ;;  %v1260_v28 = vadd.f32 %v1259_v25, %v1258_v21  ;;  %vm1129_vm2 = vcmp.eq.f32.partialorder %v1126_v35, inf  ;;  %v1171_v46 = vmul.f32 %v1971_v59, %v1169_v31 }
 0x582   :  { %v1130_v58 = vsel %vm1129_vm2, %v1126_v35, %v1128_v17 }
 0x583   :  { %v1261_v37 = vrot.slane %v1260_v28, 1  ;;  %v1173_v41 = vsel %vm1172_vm3, %v1169_v31, %v1171_v46 }
 0x584   :  { %v1176_v43 = vsel %vm1174_vm4, %v1175_v5, %v1173_v41 }
 0x585   :  { %v1262_v40 = vadd.f32 %v1261_v37, %v1260_v28 }
 0x587   :  { %1972 = vrsqrt.f32 %v1262_v40  ;;  %vm1265_vm5 = vcmp.eq.f32.partialorder %v1262_v40, inf  ;;  %v1268_v26 = vand.u32 2147483648, %v1262_v40  ;;  %vm1267_vm7 = vcmp.eq.f32.partialorder %v1262_v40, 0.0 }
 0x588   :  { %1974 = vrsqrt.f32 %v1092_v42 }
 0x591   :  { %v1973_v23 = vpop.eup %1972 }
 0x592   :  { %v1975_v6 = vpop.eup %1974  ;;  %v1264_v13 = vmul.f32 %v1973_v23, %v1262_v40 }
 0x593   :  { %v1094_v10 = vmul.f32 %v1975_v6, %v1092_v42 }
 0x594   :  { %v1266_v15 = vsel %vm1265_vm5, %v1262_v40, %v1264_v13 }
 0x595   :  { %v1096_v14 = vsel %vm1095_vm6, %v1092_v42, %v1094_v10  ;;  %v1269_v51 = vsel %vm1267_vm7, %v1268_v26, %v1266_v15 }
 0x596   :  { %v1099_v29 = vsel %vm1097_vm8, %v1098_v50, %v1096_v14  ;;  %v1270_v57 = vmul.f32 0.05, %v1269_v51 }
 0x654   :  { %v1492_v60 = vpop.f32.mrb[56].mxu0 }
 0x655   :  { %v1496_v61 = vsub.f32 %v1181_v36, %v1492_v60  ;;  %v1901_v12 = vpop.f32.mrb[57].mxu0 }
 0x656   :  { %v1133_v12 = vsel %vm1131_vm12, %v1132_v30, %v1130_v58 }
 0x657   :  { %v1497_v62 = vmul.f32 %v1496_v61, %v1496_v61  ;;  %v1116_v61 = vsel %vm1114_vm11, %v1115_v52, %v1113_v20 }
 0x658   :  { %v1134_v63 = vadd.f32 %v1133_v12, %v1116_v61 }
 0x659   :  { %v1498_v3 = vsel %vm1078_vm0, %v1497_v62, 0.0  ;;  %v1150_v62 = vand.u32 2147483648, %v1144_v24  ;;  %vm1516_vm0 = vcmask 524800  }
 0x65a   :  { %1499 = vadd.xlane.f32.xlu1 %v1498_v3  ;;  %v1148_v3 = vsel %vm1147_vm13, %v1144_v24, %v1146_v56 }
 0x65b   :  { %v1151_v39 = vsel %vm1149_vm14, %v1150_v62, %v1148_v3 }
 0x65c   :  { %v1152_v9 = vadd.f32 %v1151_v39, %v1134_v63 }
 0x65e   :  { %v1177_v45 = vadd.f32 %v1176_v43, %v1152_v9 }
 0x660   :  { %v1178_v16 = vmul.f32 0.01, %v1177_v45 }
 0x662   :  { %v1179_v55 = vadd.f32 %v1178_v16, %v1099_v29 }
 0x664   :  { %v1271_v7 = vadd.f32 %v1270_v57, %v1179_v55 }
 0x6e7   :  { %v1500_v54 = vpop.xlane.xlu1 %1499 }
 0x6e8   :  { %v1501_v33 = vrot.slane %v1500_v54, 4 }
 0x6ea   :  { %v1502_v36 = vadd.f32 %v1501_v33, %v1500_v54 }
 0x6ec   :  { %v1503_v60 = vrot.slane %v1502_v36, 2 }
 0x6ee   :  { %v1504_v2 = vadd.f32 %v1503_v60, %v1502_v36 }
 0x6f0   :  { %v1505_v1 = vrot.slane %v1504_v2, 1 }
 0x6f2   :  { %v1506_v8 = vadd.f32 %v1505_v1, %v1504_v2 }
 0x6f4   :  { %1976 = vrsqrt.f32 %v1506_v8  ;;  %vm1509_vm9 = vcmp.eq.f32.partialorder %v1506_v8, inf  ;;  %v1512_v19 = vand.u32 2147483648, %v1506_v8  ;;  %vm1511_vm10 = vcmp.eq.f32.partialorder %v1506_v8, 0.0 }
 0x6fe   :  { %v1977_v53 = vpop.eup %1976 }
 0x6ff   :  { %v1508_v18 = vmul.f32 %v1977_v53, %v1506_v8 }
 0x701   :  { %v1510_v11 = vsel %vm1509_vm9, %v1506_v8, %v1508_v18 }
 0x702   :  { %v1513_v32 = vsel %vm1511_vm10, %v1512_v19, %v1510_v11 }
 0x703   :  { %v1514_v21 = vmul.f32 0.05, %v1513_v32 }
 0x705   :  { %v1515_v35 = vadd.f32 %v1514_v21, %v1271_v7 }
 0x707   :  { %1517 = vst.msk [vmem:[#allocation2] sm:$0x1] %vm1516_vm0, %v1515_v35 }
 0x708   :  { %1989 = shalt.err (!%p1986_p4)
}
 0x709   :  { %s1990_s28 = scalar_lea.hbm %s2473_s2, 128 }
 0x70a   :  { %p1991_p5 = scmp.ne.s32.totalorder %s2473_s2, %s1990_s28  ;;  %p1994_p6 = scmp.lt.u32.totalorder %s1990_s28, %s2473_s2 }
 0x70c   :  { %p1996_p7 = pnand %p1994_p6, %p1991_p5 }
 0x70e   :  { %1999 = shalt.err (!%p1996_p7)
}
 0x70f   :  { %1527 = dma.vmem_to_hbm [thread:$0]  %s1525_s24, 128, %s2473_s2, [#allocation3]  }
 0x710   :  { %2000 = dma.done.wait [#allocation3], 128  }
 0x711   :  { %2001 = vsyncadd [#allocation3], 4294967168 }
 0x712   :  { %1531 = vsyncpa [#allocation3], 1 }

</bundles_post_ra>
